<compile_context>
chip_gen: v7x
topology: tpu7x:2x2x1
jax: 0.10.0
libtpu: 0.0.40
codegen_flags: <defaults>
</compile_context>

<pallas_src>
import jax
import jax.numpy as jnp
import numpy as np
from jax.experimental import pallas as pl
from jax.experimental.pallas import tpu as pltpu

BN_EPS = 1e-5
N_CLS_PAD = 128                      # sublane-dense classifier rows
VMEM_LIMIT_BYTES = 48 * 1024 * 1024  # safe on v5e/v6e (128 MiB) and v7x (64 MiB)


def slpnet_kernel(x_ref, w_ds_ref, w_ih_ref, w_hh_ref, b_ref,
                  w_cls_ref, b_cls_ref, out_ref,
                  gx_scr, h_scr, h_st, c_st):
    # x_ref:     (N, C, T_tile)   input block, original PyTorch Conv1d layout
    # w_ds_ref:  (D, C)           Conv1d(k=1) weight (channel-major, as stored)
    # w_ih_ref:  (4D, D)          LSTM input weights, rows [i,f,o,g], BN folded
    # w_hh_ref:  (4D, D)          LSTM hidden weights, rows [i,f,o,g]
    # b_ref:     (4D, 1)          b_ih + b_hh + w_ih @ bn_shift, rows [i,f,o,g]
    # w_cls_ref: (128, D)         classifier weight, zero-padded rows
    # b_cls_ref: (128, 1)         classifier bias, zero-padded
    # out_ref:   (N, 128, T_tile) channel-major logits (first n_cls rows valid)
    # gx_scr:    (N, 4D, T_tile)  VMEM scratch: hoisted input-projection gates
    # h_scr:     (N, D, T_tile)   VMEM scratch: relu(h_n) per recurrence step
    # h_st/c_st: (D, T_tile)      VMEM scratch: LSTM state (channel-major)
    N, _, _ = x_ref.shape
    D = w_ds_ref.shape[0]

    # ---- hoisted, recurrence-independent work (channel-major, no reshapes) ----
    # Conv1d(kernel_size=1, bias=False) + ReLU, then folded-BN input projection.
    w_ds = w_ds_ref[...]
    w_ih = w_ih_ref[...]
    b = b_ref[...]
    for n in range(N):                                 # N is tiny & static
        xc = jnp.maximum(
            jnp.dot(w_ds, x_ref[n], preferred_element_type=jnp.float32), 0.0)
        gx_scr[n] = jnp.dot(w_ih, xc, preferred_element_type=jnp.float32) + b

    # ---- LSTM recurrence over n (batch_first=False => sequence axis is N) ----
    h_st[...] = jnp.zeros_like(h_st)
    c_st[...] = jnp.zeros_like(c_st)
    w_hh = w_hh_ref[...]

    def step(n, carry):
        h = h_st[...]
        gates = gx_scr[n] + jnp.dot(w_hh, h, preferred_element_type=jnp.float32)
        # Gate rows permuted host-side to [i, f, o, g]: one sigmoid slab + one
        # tanh slab; every slice below is a sublane slice at a multiple of 8,
        # so the elementwise recurrence math stays on the VPU.
        sig = jax.nn.sigmoid(gates[:3 * D, :])
        g_g = jnp.tanh(gates[3 * D:, :])
        i_g = sig[0 * D:1 * D, :]
        f_g = sig[1 * D:2 * D, :]
        o_g = sig[2 * D:3 * D, :]
        c = f_g * c_st[...] + i_g * g_g
        h = o_g * jnp.tanh(c)
        c_st[...] = c
        h_st[...] = h
        h_scr[n] = jnp.maximum(h, 0.0)                 # post-LSTM ReLU
        return carry

    # TODO(synk): on v5e/v6e, staging w_hh in MXU weight registers
    # (pltpu.matmul_push_rhs / matmul_acc_lhs) would remove the per-step weight
    # push from the serial critical path; left as a follow-up.
    jax.lax.fori_loop(0, N, step, 0, unroll=True)

    # ---- classifier, hoisted out of the recurrence ---------------------------
    w_cls = w_cls_ref[...]
    b_cls = b_cls_ref[...]
    for n in range(N):
        out_ref[n] = (jnp.dot(w_cls, h_scr[n],
                              preferred_element_type=jnp.float32) + b_cls)


def _permute_gates(w):
    """Reorder PyTorch LSTM gate blocks [i, f, g, o] -> [i, f, o, g] (axis 0)."""
    i, f, g, o = jnp.split(w, 4, axis=0)
    return jnp.concatenate([i, f, o, g], axis=0)


def _choose_t_tile(T, N, C, D, n_cls_pad=N_CLS_PAD, vmem_budget_bytes=24 << 20):
    """Pick a T tile: multiple of 8, VMEM-budgeted, capped for v7x (64 MiB)."""
    # double-buffered x/out tiles + gate & hidden scratch, f32, per T column
    bytes_per_t = 4 * (2 * N * C + 2 * N * n_cls_pad + N * 4 * D + N * D)
    cap = max(8, (vmem_budget_bytes // bytes_per_t) // 128 * 128)
    cap = min(cap, 1024)              # v7x-safe ceiling per the perf review
    t_aligned = -(-T // 8) * 8        # round T up to a sublane multiple
    return min(t_aligned, cap)


def slpnet_forward(x_nct, params, *, t_tile=None):
    """x_nct: (N, C_in, T) float32, the PyTorch Conv1d input layout (no transpose)."""
    x = x_nct.astype(jnp.float32)
    N, C, T = x.shape
    D = params["w_hh"].shape[1]                                  # (4D, D) -> D
    n_cls = params["w_cls"].shape[0]

    # --- host-side parameter prep (exact algebra in eval mode) ---------------
    # Eval-mode BN (affine=False): y = (x - mean) * rsqrt(var + eps)
    scale = jax.lax.rsqrt(params["bn_var"] + BN_EPS)             # (D,)
    shift = -params["bn_mean"] * scale                           # (D,)

    # Gate-row permutation [i, f, g, o] -> [i, f, o, g].
    w_ih_p = _permute_gates(params["w_ih"])                      # (4D, D)
    w_hh_p = _permute_gates(params["w_hh"])                      # (4D, D)
    b_p = _permute_gates(params["b_ih"] + params["b_hh"])        # (4D,)

    # Fold BN into the input projection (channel-major):
    #   w_ih @ (scale*xc + shift) = (w_ih * scale[None,:]) @ xc + w_ih @ shift
    w_ih_f = w_ih_p * scale[None, :]                             # (4D, D)
    b_f = (w_ih_p @ shift + b_p).reshape(4 * D, 1)               # (4D, 1)

    w_ds = params["w_ds"].astype(jnp.float32)                    # (D, C)

    # Sublane-dense classifier: pad to 128 output rows (channel-major).
    w_cls_pad = jnp.zeros((N_CLS_PAD, D), jnp.float32)
    w_cls_pad = w_cls_pad.at[:n_cls].set(params["w_cls"])
    b_cls_pad = jnp.zeros((N_CLS_PAD, 1), jnp.float32)
    b_cls_pad = b_cls_pad.at[:n_cls, 0].set(params["b_cls"])

    # --- tiling over T (the LSTM's batch axis -> truly parallel) -------------
    if t_tile is None:
        t_tile = _choose_t_tile(T, N, C, D)
    t_pad = -(-T // t_tile) * t_tile
    if t_pad != T:
        x = jnp.pad(x, ((0, 0), (0, 0), (0, t_pad - T)))
    grid = (t_pad // t_tile,)

    # Advisory cost estimate (conv + input proj + recurrence + classifier).
    flops = (2 * N * t_pad * C * D            # conv (k=1)
             + 2 * N * t_pad * D * 4 * D      # input projection
             + 2 * N * t_pad * D * 4 * D      # recurrent w_hh @ h
             + 2 * N * t_pad * D * N_CLS_PAD)  # classifier
    bytes_accessed = 4 * (N * C * t_pad + N * N_CLS_PAD * t_pad
                          + w_ds.size + w_ih_f.size + w_hh_p.size + b_f.size
                          + w_cls_pad.size + b_cls_pad.size)
    cost = pl.CostEstimate(flops=int(flops),
                           transcendentals=int(N * t_pad * 5 * D),
                           bytes_accessed=int(bytes_accessed))

    out = pl.pallas_call(
        slpnet_kernel,
        out_shape=jax.ShapeDtypeStruct((N, N_CLS_PAD, t_pad), jnp.float32),
        grid_spec=pltpu.PrefetchScalarGridSpec(
            num_scalar_prefetch=0,
            grid=grid,
            in_specs=[
                pl.BlockSpec((N, C, t_tile), lambda t: (0, 0, t)),       # x
                pl.BlockSpec((D, C), lambda t: (0, 0)),                  # w_ds
                pl.BlockSpec((4 * D, D), lambda t: (0, 0)),              # w_ih
                pl.BlockSpec((4 * D, D), lambda t: (0, 0)),              # w_hh
                pl.BlockSpec((4 * D, 1), lambda t: (0, 0)),              # bias
                pl.BlockSpec((N_CLS_PAD, D), lambda t: (0, 0)),          # w_cls
                pl.BlockSpec((N_CLS_PAD, 1), lambda t: (0, 0)),          # b_cls
            ],
            out_specs=pl.BlockSpec((N, N_CLS_PAD, t_tile), lambda t: (0, 0, t)),
            scratch_shapes=[
                pltpu.VMEM((N, 4 * D, t_tile), jnp.float32),   # gates_x
                pltpu.VMEM((N, D, t_tile), jnp.float32),       # relu(h_n)
                pltpu.VMEM((D, t_tile), jnp.float32),          # h state
                pltpu.VMEM((D, t_tile), jnp.float32),          # c state
            ]),
        compiler_params=pltpu.CompilerParams(
            dimension_semantics=("parallel",),       # T axis: v7x megacore
            vmem_limit_bytes=VMEM_LIMIT_BYTES),
        cost_estimate=cost,
    )(x, w_ds, w_ih_f, w_hh_p, b_f, w_cls_pad, b_cls_pad)

    # Only the small logits tensor is permuted outside the kernel (1/8 of x's
    # bytes); the full-x transpose of rev 2 is gone.
    logits = jnp.transpose(out, (0, 2, 1))[:, :T, :n_cls]
    return jnp.squeeze(logits)                       # matches PyTorch .squeeze()


def slpnet_reference(x_nct, params):
    """Pure-JAX reference (same eval-mode semantics, un-fused) for checking."""
    x = jnp.transpose(x_nct, (0, 2, 1)).astype(jnp.float32)      # (N, T, C)
    D = params["w_hh"].shape[1]
    xc = jnp.einsum("ntc,dc->ntd", x, params["w_ds"])
    xc = jnp.maximum(xc, 0.0)
    xc = (xc - params["bn_mean"]) / jnp.sqrt(params["bn_var"] + BN_EPS)
    N, T, _ = xc.shape
    h = jnp.zeros((T, D), jnp.float32)
    c = jnp.zeros((T, D), jnp.float32)
    outs = []
    for n in range(N):
        gates = (xc[n] @ params["w_ih"].T + params["b_ih"]
                 + h @ params["w_hh"].T + params["b_hh"])
        i_g = jax.nn.sigmoid(gates[:, 0 * D:1 * D])
        f_g = jax.nn.sigmoid(gates[:, 1 * D:2 * D])
        g_g = jnp.tanh(gates[:, 2 * D:3 * D])
        o_g = jax.nn.sigmoid(gates[:, 3 * D:4 * D])
        c = f_g * c + i_g * g_g
        h = o_g * jnp.tanh(c)
        outs.append(jnp.maximum(h, 0.0) @ params["w_cls"].T + params["b_cls"])
    return jnp.squeeze(jnp.stack(outs, axis=0))


def init_params(key, c_in, model_dim, num_classes):
    ks = jax.random.split(key, 8)
    k_in = 1.0 / np.sqrt(c_in)
    k_d = 1.0 / np.sqrt(model_dim)
    return {
        # nn.Conv1d(1024, D, kernel_size=1, bias=False): weight (D, C_in, 1) -> (D, C_in)
        "w_ds": jax.random.uniform(ks[0], (model_dim, c_in), jnp.float32, -k_in, k_in),
        # BatchNorm1d(affine=False) buffers (synthetic, deterministic, var > 0)
        "bn_mean": 0.05 * jax.random.normal(ks[1], (model_dim,), jnp.float32),
        "bn_var": 1.0 + 0.1 * jax.random.uniform(ks[2], (model_dim,), jnp.float32),
        # nn.LSTM(D, D): gate order [i, f, g, o]
        "w_ih": jax.random.uniform(ks[3], (4 * model_dim, model_dim), jnp.float32, -k_d, k_d),
        "w_hh": jax.random.uniform(ks[4], (4 * model_dim, model_dim), jnp.float32, -k_d, k_d),
        "b_ih": jax.random.uniform(ks[5], (4 * model_dim,), jnp.float32, -k_d, k_d),
        "b_hh": jax.random.uniform(ks[6], (4 * model_dim,), jnp.float32, -k_d, k_d),
        # nn.Linear(D, num_classes)
        "w_cls": jax.random.uniform(ks[7], (num_classes, model_dim), jnp.float32, -k_d, k_d),
        "b_cls": jnp.linspace(-0.1, 0.1, num_classes, dtype=jnp.float32),
    }


if __name__ == "__main__":
    N, C_IN, T = 2, 1024, 8          # Conv1d in_channels is fixed at 1024 by the module
    MODEL_DIM, NUM_CLASSES = 32, 7

    key = jax.random.PRNGKey(0)
    k_x, k_p = jax.random.split(key)
    x = jax.random.normal(k_x, (N, C_IN, T), jnp.float32)   # PyTorch layout (N, C, T)
    params = init_params(k_p, C_IN, MODEL_DIM, NUM_CLASSES)

    out = jax.block_until_ready(slpnet_forward(x, params))
    ref = jax.block_until_ready(slpnet_reference(x, params))

    assert out.shape == (N, T, NUM_CLASSES), out.shape
    np.testing.assert_allclose(np.asarray(out), np.asarray(ref), rtol=1e-4, atol=1e-4)
    print("KERNEL_OK")
</pallas_src>

<mosaic_0001>
module attributes {stable_mosaic.version = 11 : i64} {
  func.func @slpnet_kernel(%arg0: i32, %arg1: memref<2x1024x8xf32, #tpu.memory_space<vmem>>, %arg2: memref<32x1024xf32, #tpu.memory_space<vmem>>, %arg3: memref<128x32xf32, #tpu.memory_space<vmem>>, %arg4: memref<128x32xf32, #tpu.memory_space<vmem>>, %arg5: memref<128x1xf32, #tpu.memory_space<vmem>>, %arg6: memref<128x32xf32, #tpu.memory_space<vmem>>, %arg7: memref<128x1xf32, #tpu.memory_space<vmem>>, %arg8: memref<2x128x8xf32, #tpu.memory_space<vmem>>, %arg9: memref<2x128x8xf32, #tpu.memory_space<vmem>>, %arg10: memref<2x32x8xf32, #tpu.memory_space<vmem>>, %arg11: memref<32x8xf32, #tpu.memory_space<vmem>>, %arg12: memref<32x8xf32, #tpu.memory_space<vmem>>) attributes {dimension_semantics = [#tpu.dimension_semantics<parallel>], iteration_bounds = array<i64: 1>, scalar_prefetch = 0 : i64, scratch_operands = 4 : i64, tpu.core_type = #tpu.core_type<tc>, window_params = [{transform_indices = @transform_0, window_bounds = array<i64: 2, 1024, 8>}, {pipeline_mode = #tpu.pipeline_mode<synchronous>, transform_indices = @transform_1, window_bounds = array<i64: 32, 1024>}, {pipeline_mode = #tpu.pipeline_mode<synchronous>, transform_indices = @transform_2, window_bounds = array<i64: 128, 32>}, {pipeline_mode = #tpu.pipeline_mode<synchronous>, transform_indices = @transform_3, window_bounds = array<i64: 128, 32>}, {pipeline_mode = #tpu.pipeline_mode<synchronous>, transform_indices = @transform_4, window_bounds = array<i64: 128, 1>}, {pipeline_mode = #tpu.pipeline_mode<synchronous>, transform_indices = @transform_5, window_bounds = array<i64: 128, 32>}, {pipeline_mode = #tpu.pipeline_mode<synchronous>, transform_indices = @transform_6, window_bounds = array<i64: 128, 1>}, {transform_indices = @transform_7, window_bounds = array<i64: 2, 128, 8>}]} {
    %c0 = arith.constant 0 : index
    %c0_0 = arith.constant 0 : index
    %0 = vector.load %arg2[%c0, %c0_0] : memref<32x1024xf32, #tpu.memory_space<vmem>>, vector<32x1024xf32>
    %c0_1 = arith.constant 0 : index
    %c0_2 = arith.constant 0 : index
    %1 = vector.load %arg3[%c0_1, %c0_2] : memref<128x32xf32, #tpu.memory_space<vmem>>, vector<128x32xf32>
    %c0_3 = arith.constant 0 : index
    %c0_4 = arith.constant 0 : index
    %2 = vector.load %arg5[%c0_3, %c0_4] : memref<128x1xf32, #tpu.memory_space<vmem>>, vector<128x1xf32>
    %c0_5 = arith.constant 0 : index
    %c0_6 = arith.constant 0 : index
    %c0_7 = arith.constant 0 : index
    %3 = vector.load %arg1[%c0_5, %c0_6, %c0_7] : memref<2x1024x8xf32, #tpu.memory_space<vmem>>, vector<1x1024x8xf32>
    %4 = vector.shape_cast %3 : vector<1x1024x8xf32> to vector<1024x8xf32>
    %cst = arith.constant dense<0.000000e+00> : vector<32x8xf32>
    %5 = tpu.matmul %0, %4, %cst {dimension_numbers = #tpu.dot_dimension_numbers<[1], [0], [0], [1], [0, 0, 1, 1], [], []>} : vector<32x1024xf32>, vector<1024x8xf32>, vector<32x8xf32> -> vector<32x8xf32>
    %cst_8 = arith.constant 0.000000e+00 : f32
    %6 = vector.broadcast %cst_8 : f32 to vector<32x8xf32>
    %7 = arith.maximumf %5, %6 : vector<32x8xf32>
    %cst_9 = arith.constant dense<0.000000e+00> : vector<128x8xf32>
    %8 = tpu.matmul %1, %7, %cst_9 {dimension_numbers = #tpu.dot_dimension_numbers<[1], [0], [0], [1], [0, 0, 1, 1], [], []>} : vector<128x32xf32>, vector<32x8xf32>, vector<128x8xf32> -> vector<128x8xf32>
    %9 = vector.broadcast %2 : vector<128x1xf32> to vector<128x8xf32>
    %10 = arith.addf %8, %9 : vector<128x8xf32>
    %c0_10 = arith.constant 0 : index
    %c0_11 = arith.constant 0 : index
    %c0_12 = arith.constant 0 : index
    %11 = vector.load %arg9[%c0_10, %c0_11, %c0_12] : memref<2x128x8xf32, #tpu.memory_space<vmem>>, vector<1x128x8xf32>
    %12 = vector.shape_cast %11 : vector<1x128x8xf32> to vector<128x8xf32>
    %13 = vector.shape_cast %10 : vector<128x8xf32> to vector<1x128x8xf32>
    tpu.vector_store %arg9[%c0_10, %c0_11, %c0_12], %13 {strides = array<i32>} : memref<2x128x8xf32, #tpu.memory_space<vmem>>, vector<1x128x8xf32>,
    %c1 = arith.constant 1 : index
    %c0_13 = arith.constant 0 : index
    %c0_14 = arith.constant 0 : index
    %14 = vector.load %arg1[%c1, %c0_13, %c0_14] : memref<2x1024x8xf32, #tpu.memory_space<vmem>>, vector<1x1024x8xf32>
    %15 = vector.shape_cast %14 : vector<1x1024x8xf32> to vector<1024x8xf32>
    %cst_15 = arith.constant dense<0.000000e+00> : vector<32x8xf32>
    %16 = tpu.matmul %0, %15, %cst_15 {dimension_numbers = #tpu.dot_dimension_numbers<[1], [0], [0], [1], [0, 0, 1, 1], [], []>} : vector<32x1024xf32>, vector<1024x8xf32>, vector<32x8xf32> -> vector<32x8xf32>
    %cst_16 = arith.constant 0.000000e+00 : f32
    %17 = vector.broadcast %cst_16 : f32 to vector<32x8xf32>
    %18 = arith.maximumf %16, %17 : vector<32x8xf32>
    %cst_17 = arith.constant dense<0.000000e+00> : vector<128x8xf32>
    %19 = tpu.matmul %1, %18, %cst_17 {dimension_numbers = #tpu.dot_dimension_numbers<[1], [0], [0], [1], [0, 0, 1, 1], [], []>} : vector<128x32xf32>, vector<32x8xf32>, vector<128x8xf32> -> vector<128x8xf32>
    %20 = vector.broadcast %2 : vector<128x1xf32> to vector<128x8xf32>
    %21 = arith.addf %19, %20 : vector<128x8xf32>
    %c1_18 = arith.constant 1 : index
    %c0_19 = arith.constant 0 : index
    %c0_20 = arith.constant 0 : index
    %22 = vector.load %arg9[%c1_18, %c0_19, %c0_20] : memref<2x128x8xf32, #tpu.memory_space<vmem>>, vector<1x128x8xf32>
    %23 = vector.shape_cast %22 : vector<1x128x8xf32> to vector<128x8xf32>
    %24 = vector.shape_cast %21 : vector<128x8xf32> to vector<1x128x8xf32>
    tpu.vector_store %arg9[%c1_18, %c0_19, %c0_20], %24 {strides = array<i32>} : memref<2x128x8xf32, #tpu.memory_space<vmem>>, vector<1x128x8xf32>,
    %cst_21 = arith.constant 0.000000e+00 : f32
    %25 = vector.broadcast %cst_21 : f32 to vector<32x8xf32>
    %c0_22 = arith.constant 0 : index
    %c0_23 = arith.constant 0 : index
    %26 = vector.load %arg11[%c0_22, %c0_23] : memref<32x8xf32, #tpu.memory_space<vmem>>, vector<32x8xf32>
    tpu.vector_store %arg11[%c0_22, %c0_23], %25 {strides = array<i32>} : memref<32x8xf32, #tpu.memory_space<vmem>>, vector<32x8xf32>,
    %cst_24 = arith.constant 0.000000e+00 : f32
    %27 = vector.broadcast %cst_24 : f32 to vector<32x8xf32>
    %c0_25 = arith.constant 0 : index
    %c0_26 = arith.constant 0 : index
    %28 = vector.load %arg12[%c0_25, %c0_26] : memref<32x8xf32, #tpu.memory_space<vmem>>, vector<32x8xf32>
    tpu.vector_store %arg12[%c0_25, %c0_26], %27 {strides = array<i32>} : memref<32x8xf32, #tpu.memory_space<vmem>>, vector<32x8xf32>,
    %c0_27 = arith.constant 0 : index
    %c0_28 = arith.constant 0 : index
    %29 = vector.load %arg4[%c0_27, %c0_28] : memref<128x32xf32, #tpu.memory_space<vmem>>, vector<128x32xf32>
    %c0_i32 = arith.constant 0 : i32
    %c0_29 = arith.constant 0 : index
    %c0_30 = arith.constant 0 : index
    %30 = vector.load %arg11[%c0_29, %c0_30] : memref<32x8xf32, #tpu.memory_space<vmem>>, vector<32x8xf32>
    %31 = arith.index_cast %c0_i32 : i32 to index
    %c0_31 = arith.constant 0 : index
    %c0_32 = arith.constant 0 : index
    %32 = vector.load %arg9[%31, %c0_31, %c0_32] : memref<2x128x8xf32, #tpu.memory_space<vmem>>, vector<1x128x8xf32>
    %33 = vector.shape_cast %32 : vector<1x128x8xf32> to vector<128x8xf32>
    %cst_33 = arith.constant dense<0.000000e+00> : vector<128x8xf32>
    %34 = tpu.matmul %29, %30, %cst_33 {dimension_numbers = #tpu.dot_dimension_numbers<[1], [0], [0], [1], [0, 0, 1, 1], [], []>} : vector<128x32xf32>, vector<32x8xf32>, vector<128x8xf32> -> vector<128x8xf32>
    %35 = arith.addf %33, %34 : vector<128x8xf32>
    %36 = vector.extract_strided_slice %35 {offsets = [0, 0], sizes = [96, 8], strides = [1, 1]} : vector<128x8xf32> to vector<96x8xf32>
    %37 = arith.negf %36 : vector<96x8xf32>
    %38 = math.exp %37 : vector<96x8xf32>
    %cst_34 = arith.constant 1.000000e+00 : f32
    %39 = vector.broadcast %cst_34 : f32 to vector<96x8xf32>
    %40 = arith.addf %39, %38 : vector<96x8xf32>
    %41 = arith.divf %39, %40 : vector<96x8xf32>
    %42 = vector.extract_strided_slice %35 {offsets = [96, 0], sizes = [32, 8], strides = [1, 1]} : vector<128x8xf32> to vector<32x8xf32>
    %43 = math.tanh %42 : vector<32x8xf32>
    %44 = vector.extract_strided_slice %41 {offsets = [0, 0], sizes = [32, 8], strides = [1, 1]} : vector<96x8xf32> to vector<32x8xf32>
    %45 = vector.extract_strided_slice %41 {offsets = [32, 0], sizes = [32, 8], strides = [1, 1]} : vector<96x8xf32> to vector<32x8xf32>
    %46 = vector.extract_strided_slice %41 {offsets = [64, 0], sizes = [32, 8], strides = [1, 1]} : vector<96x8xf32> to vector<32x8xf32>
    %c0_35 = arith.constant 0 : index
    %c0_36 = arith.constant 0 : index
    %47 = vector.load %arg12[%c0_35, %c0_36] : memref<32x8xf32, #tpu.memory_space<vmem>>, vector<32x8xf32>
    %48 = arith.mulf %45, %47 : vector<32x8xf32>
    %49 = arith.mulf %44, %43 : vector<32x8xf32>
    %50 = arith.addf %48, %49 : vector<32x8xf32>
    %51 = math.tanh %50 : vector<32x8xf32>
    %52 = arith.mulf %46, %51 : vector<32x8xf32>
    %c0_37 = arith.constant 0 : index
    %c0_38 = arith.constant 0 : index
    %53 = vector.load %arg12[%c0_37, %c0_38] : memref<32x8xf32, #tpu.memory_space<vmem>>, vector<32x8xf32>
    tpu.vector_store %arg12[%c0_37, %c0_38], %50 {strides = array<i32>} : memref<32x8xf32, #tpu.memory_space<vmem>>, vector<32x8xf32>,
    %c0_39 = arith.constant 0 : index
    %c0_40 = arith.constant 0 : index
    %54 = vector.load %arg11[%c0_39, %c0_40] : memref<32x8xf32, #tpu.memory_space<vmem>>, vector<32x8xf32>
    tpu.vector_store %arg11[%c0_39, %c0_40], %52 {strides = array<i32>} : memref<32x8xf32, #tpu.memory_space<vmem>>, vector<32x8xf32>,
    %cst_41 = arith.constant 0.000000e+00 : f32
    %55 = vector.broadcast %cst_41 : f32 to vector<32x8xf32>
    %56 = arith.maximumf %52, %55 : vector<32x8xf32>
    %57 = arith.index_cast %c0_i32 : i32 to index
    %c0_42 = arith.constant 0 : index
    %c0_43 = arith.constant 0 : index
    %58 = vector.load %arg10[%57, %c0_42, %c0_43] : memref<2x32x8xf32, #tpu.memory_space<vmem>>, vector<1x32x8xf32>
    %59 = vector.shape_cast %58 : vector<1x32x8xf32> to vector<32x8xf32>
    %60 = vector.shape_cast %56 : vector<32x8xf32> to vector<1x32x8xf32>
    tpu.vector_store %arg10[%57, %c0_42, %c0_43], %60 {strides = array<i32>} : memref<2x32x8xf32, #tpu.memory_space<vmem>>, vector<1x32x8xf32>,
    %c1_i32 = arith.constant 1 : i32
    %c0_44 = arith.constant 0 : index
    %c0_45 = arith.constant 0 : index
    %61 = vector.load %arg11[%c0_44, %c0_45] : memref<32x8xf32, #tpu.memory_space<vmem>>, vector<32x8xf32>
    %62 = arith.index_cast %c1_i32 : i32 to index
    %c0_46 = arith.constant 0 : index
    %c0_47 = arith.constant 0 : index
    %63 = vector.load %arg9[%62, %c0_46, %c0_47] : memref<2x128x8xf32, #tpu.memory_space<vmem>>, vector<1x128x8xf32>
    %64 = vector.shape_cast %63 : vector<1x128x8xf32> to vector<128x8xf32>
    %cst_48 = arith.constant dense<0.000000e+00> : vector<128x8xf32>
    %65 = tpu.matmul %29, %61, %cst_48 {dimension_numbers = #tpu.dot_dimension_numbers<[1], [0], [0], [1], [0, 0, 1, 1], [], []>} : vector<128x32xf32>, vector<32x8xf32>, vector<128x8xf32> -> vector<128x8xf32>
    %66 = arith.addf %64, %65 : vector<128x8xf32>
    %67 = vector.extract_strided_slice %66 {offsets = [0, 0], sizes = [96, 8], strides = [1, 1]} : vector<128x8xf32> to vector<96x8xf32>
    %68 = arith.negf %67 : vector<96x8xf32>
    %69 = math.exp %68 : vector<96x8xf32>
    %cst_49 = arith.constant 1.000000e+00 : f32
    %70 = vector.broadcast %cst_49 : f32 to vector<96x8xf32>
    %71 = arith.addf %70, %69 : vector<96x8xf32>
    %72 = arith.divf %70, %71 : vector<96x8xf32>
    %73 = vector.extract_strided_slice %66 {offsets = [96, 0], sizes = [32, 8], strides = [1, 1]} : vector<128x8xf32> to vector<32x8xf32>
    %74 = math.tanh %73 : vector<32x8xf32>
    %75 = vector.extract_strided_slice %72 {offsets = [0, 0], sizes = [32, 8], strides = [1, 1]} : vector<96x8xf32> to vector<32x8xf32>
    %76 = vector.extract_strided_slice %72 {offsets = [32, 0], sizes = [32, 8], strides = [1, 1]} : vector<96x8xf32> to vector<32x8xf32>
    %77 = vector.extract_strided_slice %72 {offsets = [64, 0], sizes = [32, 8], strides = [1, 1]} : vector<96x8xf32> to vector<32x8xf32>
    %c0_50 = arith.constant 0 : index
    %c0_51 = arith.constant 0 : index
    %78 = vector.load %arg12[%c0_50, %c0_51] : memref<32x8xf32, #tpu.memory_space<vmem>>, vector<32x8xf32>
    %79 = arith.mulf %76, %78 : vector<32x8xf32>
    %80 = arith.mulf %75, %74 : vector<32x8xf32>
    %81 = arith.addf %79, %80 : vector<32x8xf32>
    %82 = math.tanh %81 : vector<32x8xf32>
    %83 = arith.mulf %77, %82 : vector<32x8xf32>
    %c0_52 = arith.constant 0 : index
    %c0_53 = arith.constant 0 : index
    %84 = vector.load %arg12[%c0_52, %c0_53] : memref<32x8xf32, #tpu.memory_space<vmem>>, vector<32x8xf32>
    tpu.vector_store %arg12[%c0_52, %c0_53], %81 {strides = array<i32>} : memref<32x8xf32, #tpu.memory_space<vmem>>, vector<32x8xf32>,
    %c0_54 = arith.constant 0 : index
    %c0_55 = arith.constant 0 : index
    %85 = vector.load %arg11[%c0_54, %c0_55] : memref<32x8xf32, #tpu.memory_space<vmem>>, vector<32x8xf32>
    tpu.vector_store %arg11[%c0_54, %c0_55], %83 {strides = array<i32>} : memref<32x8xf32, #tpu.memory_space<vmem>>, vector<32x8xf32>,
    %cst_56 = arith.constant 0.000000e+00 : f32
    %86 = vector.broadcast %cst_56 : f32 to vector<32x8xf32>
    %87 = arith.maximumf %83, %86 : vector<32x8xf32>
    %88 = arith.index_cast %c1_i32 : i32 to index
    %c0_57 = arith.constant 0 : index
    %c0_58 = arith.constant 0 : index
    %89 = vector.load %arg10[%88, %c0_57, %c0_58] : memref<2x32x8xf32, #tpu.memory_space<vmem>>, vector<1x32x8xf32>
    %90 = vector.shape_cast %89 : vector<1x32x8xf32> to vector<32x8xf32>
    %91 = vector.shape_cast %87 : vector<32x8xf32> to vector<1x32x8xf32>
    tpu.vector_store %arg10[%88, %c0_57, %c0_58], %91 {strides = array<i32>} : memref<2x32x8xf32, #tpu.memory_space<vmem>>, vector<1x32x8xf32>,
    %c2_i32 = arith.constant 2 : i32
    %c0_59 = arith.constant 0 : index
    %c0_60 = arith.constant 0 : index
    %92 = vector.load %arg6[%c0_59, %c0_60] : memref<128x32xf32, #tpu.memory_space<vmem>>, vector<128x32xf32>
    %c0_61 = arith.constant 0 : index
    %c0_62 = arith.constant 0 : index
    %93 = vector.load %arg7[%c0_61, %c0_62] : memref<128x1xf32, #tpu.memory_space<vmem>>, vector<128x1xf32>
    %c0_63 = arith.constant 0 : index
    %c0_64 = arith.constant 0 : index
    %c0_65 = arith.constant 0 : index
    %94 = vector.load %arg10[%c0_63, %c0_64, %c0_65] : memref<2x32x8xf32, #tpu.memory_space<vmem>>, vector<1x32x8xf32>
    %95 = vector.shape_cast %94 : vector<1x32x8xf32> to vector<32x8xf32>
    %cst_66 = arith.constant dense<0.000000e+00> : vector<128x8xf32>
    %96 = tpu.matmul %92, %95, %cst_66 {dimension_numbers = #tpu.dot_dimension_numbers<[1], [0], [0], [1], [0, 0, 1, 1], [], []>} : vector<128x32xf32>, vector<32x8xf32>, vector<128x8xf32> -> vector<128x8xf32>
    %97 = vector.broadcast %93 : vector<128x1xf32> to vector<128x8xf32>
    %98 = arith.addf %96, %97 : vector<128x8xf32>
    %c0_67 = arith.constant 0 : index
    %c0_68 = arith.constant 0 : index
    %c0_69 = arith.constant 0 : index
    %99 = vector.load %arg8[%c0_67, %c0_68, %c0_69] : memref<2x128x8xf32, #tpu.memory_space<vmem>>, vector<1x128x8xf32>
    %100 = vector.shape_cast %99 : vector<1x128x8xf32> to vector<128x8xf32>
    %101 = vector.shape_cast %98 : vector<128x8xf32> to vector<1x128x8xf32>
    tpu.vector_store %arg8[%c0_67, %c0_68, %c0_69], %101 {strides = array<i32>} : memref<2x128x8xf32, #tpu.memory_space<vmem>>, vector<1x128x8xf32>,
    %c1_70 = arith.constant 1 : index
    %c0_71 = arith.constant 0 : index
    %c0_72 = arith.constant 0 : index
    %102 = vector.load %arg10[%c1_70, %c0_71, %c0_72] : memref<2x32x8xf32, #tpu.memory_space<vmem>>, vector<1x32x8xf32>
    %103 = vector.shape_cast %102 : vector<1x32x8xf32> to vector<32x8xf32>
    %cst_73 = arith.constant dense<0.000000e+00> : vector<128x8xf32>
    %104 = tpu.matmul %92, %103, %cst_73 {dimension_numbers = #tpu.dot_dimension_numbers<[1], [0], [0], [1], [0, 0, 1, 1], [], []>} : vector<128x32xf32>, vector<32x8xf32>, vector<128x8xf32> -> vector<128x8xf32>
    %105 = vector.broadcast %93 : vector<128x1xf32> to vector<128x8xf32>
    %106 = arith.addf %104, %105 : vector<128x8xf32>
    %c1_74 = arith.constant 1 : index
    %c0_75 = arith.constant 0 : index
    %c0_76 = arith.constant 0 : index
    %107 = vector.load %arg8[%c1_74, %c0_75, %c0_76] : memref<2x128x8xf32, #tpu.memory_space<vmem>>, vector<1x128x8xf32>
    %108 = vector.shape_cast %107 : vector<1x128x8xf32> to vector<128x8xf32>
    %109 = vector.shape_cast %106 : vector<128x8xf32> to vector<1x128x8xf32>
    tpu.vector_store %arg8[%c1_74, %c0_75, %c0_76], %109 {strides = array<i32>} : memref<2x128x8xf32, #tpu.memory_space<vmem>>, vector<1x128x8xf32>,
    return
  }
  func.func @transform_0(%arg0: i32) -> (i32, i32, i32) {
    %c0_i32 = arith.constant 0 : i32
    %c0_i32_0 = arith.constant 0 : i32
    %c0_i32_1 = arith.constant 0 : i32
    return %c0_i32, %c0_i32_0, %arg0 : i32, i32, i32
  }
  func.func @transform_1(%arg0: i32) -> (i32, i32) {
    %c0_i32 = arith.constant 0 : i32
    %c0_i32_0 = arith.constant 0 : i32
    %c0_i32_1 = arith.constant 0 : i32
    return %c0_i32, %c0_i32_0 : i32, i32
  }
  func.func @transform_2(%arg0: i32) -> (i32, i32) {
    %c0_i32 = arith.constant 0 : i32
    %c0_i32_0 = arith.constant 0 : i32
    %c0_i32_1 = arith.constant 0 : i32
    return %c0_i32, %c0_i32_0 : i32, i32
  }
  func.func @transform_3(%arg0: i32) -> (i32, i32) {
    %c0_i32 = arith.constant 0 : i32
    %c0_i32_0 = arith.constant 0 : i32
    %c0_i32_1 = arith.constant 0 : i32
    return %c0_i32, %c0_i32_0 : i32, i32
  }
  func.func @transform_4(%arg0: i32) -> (i32, i32) {
    %c0_i32 = arith.constant 0 : i32
    %c0_i32_0 = arith.constant 0 : i32
    %c0_i32_1 = arith.constant 0 : i32
    return %c0_i32, %c0_i32_0 : i32, i32
  }
  func.func @transform_5(%arg0: i32) -> (i32, i32) {
    %c0_i32 = arith.constant 0 : i32
    %c0_i32_0 = arith.constant 0 : i32
    %c0_i32_1 = arith.constant 0 : i32
    return %c0_i32, %c0_i32_0 : i32, i32
  }
  func.func @transform_6(%arg0: i32) -> (i32, i32) {
    %c0_i32 = arith.constant 0 : i32
    %c0_i32_0 = arith.constant 0 : i32
    %c0_i32_1 = arith.constant 0 : i32
    return %c0_i32, %c0_i32_0 : i32, i32
  }
  func.func @transform_7(%arg0: i32) -> (i32, i32, i32) {
    %c0_i32 = arith.constant 0 : i32
    %c0_i32_0 = arith.constant 0 : i32
    %c0_i32_1 = arith.constant 0 : i32
    return %c0_i32, %c0_i32_0, %arg0 : i32, i32, i32
  }
}

</mosaic_0001>

<bundles_post_ra>
// kernel: tpu_custom_call.1
= control target key start
LH: loop header
LB: loop body
LE: loop exit
PB: predicated region body
PF: predicated region fallthrough
CT: control target
= control target key end

     0   :  { %vm642_vm0 = vcmask 261120   ;;  %vm836_vm1 = vcmask 64512   ;;  %s5923_s0 = inlined_call_operand.vmem [shape: f32[2,1024,8], index: 0, kind: input, shape index: {}]   ;;  %s5924_s1 = inlined_call_operand.vmem [shape: f32[32,1024], index: 1, kind: input, shape index: {}]   ;;  %s5925_s2 = inlined_call_operand.vmem [shape: f32[128,32], index: 2, kind: input, shape index: {}]   ;;  %s5926_s4 = inlined_call_operand.vmem [shape: f32[128,1], index: 4, kind: input, shape index: {}]   ;;  %s5927_s6 = inlined_call_operand.vmem [shape: f32[128,1], index: 6, kind: input, shape index: {}]   ;;  %s5928_s3 = inlined_call_operand.vmem [shape: f32[128,32], index: 3, kind: input, shape index: {}]   ;;  %s5929_s5 = inlined_call_operand.vmem [shape: f32[128,32], index: 5, kind: input, shape index: {}]   ;;  %s5930_s7 = inlined_call_operand.vmem [shape: f32[2,128,8], index: 7, kind: output, shape index: {}]  }
   0x1   :  { %v106_v0 = vld [vmem:[%s5923_s0 + $0x80] sm:$0xff]  ;;  %v107_v1 = vld [vmem:[%s5923_s0 + $0x88] sm:$0xff]  ;;  %v108_v11 = vld [vmem:[%s5923_s0 + $0x90] sm:$0xff] }
   0x2   :  { %v138_v2 = vld [vmem:[%s5923_s0 + $0x180] sm:$0xff]  ;;  %v3578_v3 = vpack.c.bf16 %v107_v1, %v106_v0  ;;  %v139_v4 = vld [vmem:[%s5923_s0 + $0x188] sm:$0xff]  ;;  %v109_v13 = vld [vmem:[%s5923_s0 + $0x98] sm:$0xff] }
   0x3   :  { %v90_v5 = vld [vmem:[%s5923_s0] sm:$0xff]  ;;  %v91_v6 = vld [vmem:[%s5923_s0 + $0x8] sm:$0xff]  ;;  %v3610_v7 = vpack.c.bf16 %v139_v4, %v138_v2  ;;  %v140_v14 = vld [vmem:[%s5923_s0 + $0x190] sm:$0xff]  ;;  %v3582_v16 = vpack.c.bf16 %v109_v13, %v108_v11 }
   0x4   :  { %v3580_v8 = vpack.c.bf16 %v91_v6, %v90_v5  ;;  %v122_v9 = vld [vmem:[%s5923_s0 + $0x100] sm:$0xff]  ;;  %v123_v10 = vld [vmem:[%s5923_s0 + $0x108] sm:$0xff]  ;;  %3579 = vmatprep.subr.bf16.mxu0 %v3578_v3  ;;  %v141_v15 = vld [vmem:[%s5923_s0 + $0x198] sm:$0xff] }
   0x5   :  { %v3612_v12 = vpack.c.bf16 %v123_v10, %v122_v9  ;;  %3611 = vmatprep.subr.bf16.mxu1 %v3610_v7  ;;  %v3614_v17 = vpack.c.bf16 %v141_v15, %v140_v14  ;;  %v92_v18 = vld [vmem:[%s5923_s0 + $0x10] sm:$0xff]  ;;  %v93_v19 = vld [vmem:[%s5923_s0 + $0x18] sm:$0xff]  ;;  %v110_v23 = vld [vmem:[%s5923_s0 + $0xa0] sm:$0xff] }
   0x6   :  { %3581 = vmatpush3.bf16.msra.mxu0 %v3580_v8  ;;  %v124_v20 = vld [vmem:[%s5923_s0 + $0x110] sm:$0xff]  ;;  %v3584_v21 = vpack.c.bf16 %v93_v19, %v92_v18  ;;  %v125_v22 = vld [vmem:[%s5923_s0 + $0x118] sm:$0xff]  ;;  %v111_v24 = vld [vmem:[%s5923_s0 + $0xa8] sm:$0xff] }
   0x7   :  { %3613 = vmatpush3.bf16.msra.mxu1 %v3612_v12  ;;  %3583 = vmatprep.subr.bf16.mxu0 %v3582_v16  ;;  %v3616_v25 = vpack.c.bf16 %v125_v22, %v124_v20  ;;  %v3586_v26 = vpack.c.bf16 %v111_v24, %v110_v23  ;;  %v142_v27 = vld [vmem:[%s5923_s0 + $0x1a0] sm:$0xff]  ;;  %v143_v28 = vld [vmem:[%s5923_s0 + $0x1a8] sm:$0xff]  ;;  %v112_v35 = vld [vmem:[%s5923_s0 + $0xb0] sm:$0xff] }
   0x8   :  { %3615 = vmatprep.subr.bf16.mxu1 %v3614_v17  ;;  %v94_v29 = vld [vmem:[%s5923_s0 + $0x20] sm:$0xff]  ;;  %v3618_v30 = vpack.c.bf16 %v143_v28, %v142_v27  ;;  %v95_v31 = vld [vmem:[%s5923_s0 + $0x28] sm:$0xff]  ;;  %v113_v36 = vld [vmem:[%s5923_s0 + $0xb8] sm:$0xff] }
   0x9   :  { %v126_v32 = vld [vmem:[%s5923_s0 + $0x120] sm:$0xff]  ;;  %v127_v33 = vld [vmem:[%s5923_s0 + $0x128] sm:$0xff]  ;;  %v3588_v34 = vpack.c.bf16 %v95_v31, %v94_v29  ;;  %v144_v37 = vld [vmem:[%s5923_s0 + $0x1b0] sm:$0xff]  ;;  %v3590_v39 = vpack.c.bf16 %v113_v36, %v112_v35 }
   0xa   :  { %3585 = vmatpush3.bf16.msra.mxu0 %v3584_v21  ;;  %v3620_v38 = vpack.c.bf16 %v127_v33, %v126_v32  ;;  %v145_v40 = vld [vmem:[%s5923_s0 + $0x1b8] sm:$0xff]  ;;  %v96_v41 = vld [vmem:[%s5923_s0 + $0x30] sm:$0xff]  ;;  %v114_v46 = vld [vmem:[%s5923_s0 + $0xc0] sm:$0xff] }
   0xb   :  { %3617 = vmatpush3.bf16.msra.mxu1 %v3616_v25  ;;  %3587 = vmatprep.subr.bf16.mxu0 %v3586_v26  ;;  %v97_v42 = vld [vmem:[%s5923_s0 + $0x38] sm:$0xff]  ;;  %v3622_v43 = vpack.c.bf16 %v145_v40, %v144_v37  ;;  %v128_v44 = vld [vmem:[%s5923_s0 + $0x130] sm:$0xff]  ;;  %v115_v47 = vld [vmem:[%s5923_s0 + $0xc8] sm:$0xff] }
   0xc   :  { %3619 = vmatprep.subr.bf16.mxu1 %v3618_v30  ;;  %v129_v45 = vld [vmem:[%s5923_s0 + $0x138] sm:$0xff]  ;;  %v146_v48 = vld [vmem:[%s5923_s0 + $0x1c0] sm:$0xff]  ;;  %v147_v49 = vld [vmem:[%s5923_s0 + $0x1c8] sm:$0xff]  ;;  %v3592_v50 = vpack.c.bf16 %v97_v42, %v96_v41  ;;  %v3594_v52 = vpack.c.bf16 %v115_v47, %v114_v46 }
   0xd   :  { %v3624_v51 = vpack.c.bf16 %v129_v45, %v128_v44  ;;  %v98_v53 = vld [vmem:[%s5923_s0 + $0x40] sm:$0xff]  ;;  %v99_v54 = vld [vmem:[%s5923_s0 + $0x48] sm:$0xff]  ;;  %v3626_v56 = vpack.c.bf16 %v147_v49, %v146_v48  ;;  %v116_v58 = vld [vmem:[%s5923_s0 + $0xd0] sm:$0xff] }
   0xe   :  { %3589 = vmatpush3.bf16.msra.mxu0 %v3588_v34  ;;  %v130_v55 = vld [vmem:[%s5923_s0 + $0x140] sm:$0xff]  ;;  %v131_v57 = vld [vmem:[%s5923_s0 + $0x148] sm:$0xff]  ;;  %v117_v59 = vld [vmem:[%s5923_s0 + $0xd8] sm:$0xff]  ;;  %v3596_v62 = vpack.c.bf16 %v99_v54, %v98_v53 }
   0xf   :  { %3621 = vmatpush3.bf16.msra.mxu1 %v3620_v38  ;;  %3591 = vmatprep.subr.bf16.mxu0 %v3590_v39  ;;  %v148_v60 = vld [vmem:[%s5923_s0 + $0x1d0] sm:$0xff]  ;;  %v149_v61 = vld [vmem:[%s5923_s0 + $0x1d8] sm:$0xff]  ;;  %v3628_v63 = vpack.c.bf16 %v131_v57, %v130_v55  ;;  %v3598_v0 = vpack.c.bf16 %v117_v59, %v116_v58  ;;  %v118_v6 = vld [vmem:[%s5923_s0 + $0xe0] sm:$0xff] }
  0x10   :  { %3623 = vmatprep.subr.bf16.mxu1 %v3622_v43  ;;  %v100_v1 = vld [vmem:[%s5923_s0 + $0x50] sm:$0xff]  ;;  %v101_v2 = vld [vmem:[%s5923_s0 + $0x58] sm:$0xff]  ;;  %v3630_v4 = vpack.c.bf16 %v149_v61, %v148_v60  ;;  %v119_v7 = vld [vmem:[%s5923_s0 + $0xe8] sm:$0xff] }
  0x11   :  { %v132_v3 = vld [vmem:[%s5923_s0 + $0x150] sm:$0xff]  ;;  %v133_v5 = vld [vmem:[%s5923_s0 + $0x158] sm:$0xff]  ;;  %v150_v8 = vld [vmem:[%s5923_s0 + $0x1e0] sm:$0xff]  ;;  %v3600_v10 = vpack.c.bf16 %v101_v2, %v100_v1  ;;  %v3602_v14 = vpack.c.bf16 %v119_v7, %v118_v6 }
  0x12   :  { %3593 = vmatpush3.bf16.msra.mxu0 %v3592_v50  ;;  %v151_v9 = vld [vmem:[%s5923_s0 + $0x1e8] sm:$0xff]  ;;  %v102_v11 = vld [vmem:[%s5923_s0 + $0x60] sm:$0xff]  ;;  %v3632_v13 = vpack.c.bf16 %v133_v5, %v132_v3  ;;  %v29_v17 = vld [vmem:[%s5924_s1 + $0x18] sm:$0xff] }
  0x13   :  { %3625 = vmatpush3.bf16.msra.mxu1 %v3624_v51  ;;  %3595 = vmatprep.subr.bf16.mxu0 %v3594_v52  ;;  %v103_v12 = vld [vmem:[%s5923_s0 + $0x68] sm:$0xff]  ;;  %v134_v15 = vld [vmem:[%s5923_s0 + $0x160] sm:$0xff]  ;;  %v3634_v18 = vpack.c.bf16 %v151_v9, %v150_v8  ;;  %v120_v20 = vld [vmem:[%s5923_s0 + $0xf0] sm:$0xff] }
  0x14   :  { %3627 = vmatprep.subr.bf16.mxu1 %v3626_v56  ;;  %v4232_v16 = vld [vmem:[%s5924_s1 + $0x8] sm:$0xff]  ;;  %v121_v21 = vld [vmem:[%s5923_s0 + $0xf8] sm:$0xff]  ;;  %v152_v22 = vld [vmem:[%s5923_s0 + $0x1f0] sm:$0xff]  ;;  %367 = vmatprep.mubr.f32.mxu1 %v29_v17  ;;  %v3604_v24 = vpack.c.bf16 %v103_v12, %v102_v11 }
  0x15   :  { %v135_v19 = vld [vmem:[%s5923_s0 + $0x168] sm:$0xff]  ;;  %282 = vmatprep.mubr.f32.mxu0 %v4232_v16  ;;  %v153_v23 = vld [vmem:[%s5923_s0 + $0x1f8] sm:$0xff]  ;;  %v3606_v26 = vpack.c.bf16 %v121_v21, %v120_v20  ;;  %v104_v27 = vld [vmem:[%s5923_s0 + $0x70] sm:$0xff] }
  0x16   :  { %3597 = vmatpush3.bf16.msra.mxu0 %v3596_v62  ;;  %v3636_v25 = vpack.c.bf16 %v135_v19, %v134_v15  ;;  %v105_v28 = vld [vmem:[%s5923_s0 + $0x78] sm:$0xff]  ;;  %v136_v29 = vld [vmem:[%s5923_s0 + $0x170] sm:$0xff]  ;;  %v3638_v30 = vpack.c.bf16 %v153_v23, %v152_v22  ;;  %v170_v32 = vld [vmem:[%s5923_s0 + $0x280] sm:$0xff] }
  0x17   :  { %3629 = vmatpush3.bf16.msra.mxu1 %v3628_v63  ;;  %3599 = vmatprep.subr.bf16.mxu0 %v3598_v0  ;;  %v137_v31 = vld [vmem:[%s5923_s0 + $0x178] sm:$0xff]  ;;  %v171_v33 = vld [vmem:[%s5923_s0 + $0x288] sm:$0xff]  ;;  %v202_v34 = vld [vmem:[%s5923_s0 + $0x380] sm:$0xff]  ;;  %v3608_v36 = vpack.c.bf16 %v105_v28, %v104_v27 }
  0x18   :  { %3631 = vmatprep.subr.bf16.mxu1 %v3630_v4  ;;  %v203_v35 = vld [vmem:[%s5923_s0 + $0x388] sm:$0xff]  ;;  %v3640_v37 = vpack.c.bf16 %v137_v31, %v136_v29  ;;  %v3642_v38 = vpack.c.bf16 %v171_v33, %v170_v32  ;;  %v154_v39 = vld [vmem:[%s5923_s0 + $0x200] sm:$0xff]  ;;  %v172_v44 = vld [vmem:[%s5923_s0 + $0x290] sm:$0xff] }
  0x19   :  { %v155_v40 = vld [vmem:[%s5923_s0 + $0x208] sm:$0xff]  ;;  %v186_v41 = vld [vmem:[%s5923_s0 + $0x300] sm:$0xff]  ;;  %v3674_v42 = vpack.c.bf16 %v203_v35, %v202_v34  ;;  %v173_v45 = vld [vmem:[%s5923_s0 + $0x298] sm:$0xff] }
  0x1a   :  { %3601 = vmatpush3.bf16.msra.mxu0 %v3600_v10  ;;  %v187_v43 = vld [vmem:[%s5923_s0 + $0x308] sm:$0xff]  ;;  %v204_v46 = vld [vmem:[%s5923_s0 + $0x390] sm:$0xff]  ;;  %v205_v47 = vld [vmem:[%s5923_s0 + $0x398] sm:$0xff]  ;;  %v3644_v50 = vpack.c.bf16 %v155_v40, %v154_v39  ;;  %v3646_v52 = vpack.c.bf16 %v173_v45, %v172_v44 }
  0x1b   :  { %3633 = vmatpush3.bf16.msra.mxu1 %v3632_v13  ;;  %3603 = vmatprep.subr.bf16.mxu0 %v3602_v14  ;;  %v4304_v48 = vld [vmem:[%s5924_s1] sm:$0xff]  ;;  %v28_v49 = vld [vmem:[%s5924_s1 + $0x10] sm:$0xff]  ;;  %v3676_v51 = vpack.c.bf16 %v187_v43, %v186_v41  ;;  %v157_v54 = vld [vmem:[%s5923_s0 + $0x218] sm:$0xff]  ;;  %v3678_v56 = vpack.c.bf16 %v205_v47, %v204_v46 }
  0x1c   :  { %3635 = vmatprep.subr.bf16.mxu1 %v3634_v18  ;;  %v156_v53 = vld [vmem:[%s5923_s0 + $0x210] sm:$0xff]  ;;  %v189_v57 = vld [vmem:[%s5923_s0 + $0x318] sm:$0xff]  ;;  %v174_v58 = vld [vmem:[%s5923_s0 + $0x2a0] sm:$0xff] }
  0x1d   :  { %v188_v55 = vld [vmem:[%s5923_s0 + $0x310] sm:$0xff]  ;;  %v175_v59 = vld [vmem:[%s5923_s0 + $0x2a8] sm:$0xff]  ;;  %v206_v60 = vld [vmem:[%s5923_s0 + $0x3a0] sm:$0xff]  ;;  %v3648_v63 = vpack.c.bf16 %v157_v54, %v156_v53 }
  0x1e   :  { %3605 = vmatpush3.bf16.msra.mxu0 %v3604_v24  ;;  %v207_v61 = vld [vmem:[%s5923_s0 + $0x3a8] sm:$0xff]  ;;  %v158_v0 = vld [vmem:[%s5923_s0 + $0x220] sm:$0xff]  ;;  %v37_v1 = vld [vmem:[%s5924_s1 + $0x58] sm:$0xff]  ;;  %v3680_v3 = vpack.c.bf16 %v189_v57, %v188_v55  ;;  %v3650_v4 = vpack.c.bf16 %v175_v59, %v174_v58 }
  0x1f   :  { %3637 = vmatpush3.bf16.msra.mxu1 %v3636_v25  ;;  %3607 = vmatprep.subr.bf16.mxu0 %v3606_v26  ;;  %v4337_v62 = vld [vmem:[%s5924_s1 + $0x48] sm:$0xff]  ;;  %v4348_v2 = vld [vmem:[%s5924_s1 + $0x40] sm:$0xff]  ;;  %v36_v7 = vld [vmem:[%s5924_s1 + $0x50] sm:$0xff]  ;;  %v3682_v8 = vpack.c.bf16 %v207_v61, %v206_v60 }
  0x20   :  { %3639 = vmatprep.subr.bf16.mxu1 %v3638_v30  ;;  %v159_v5 = vld [vmem:[%s5923_s0 + $0x228] sm:$0xff]  ;;  %v190_v6 = vld [vmem:[%s5923_s0 + $0x320] sm:$0xff]  ;;  %v176_v10 = vld [vmem:[%s5923_s0 + $0x2b0] sm:$0xff] }
  0x21   :  { %v191_v9 = vld [vmem:[%s5923_s0 + $0x328] sm:$0xff]  ;;  %v177_v11 = vld [vmem:[%s5923_s0 + $0x2b8] sm:$0xff]  ;;  %v208_v12 = vld [vmem:[%s5923_s0 + $0x3b0] sm:$0xff]  ;;  %v3652_v15 = vpack.c.bf16 %v159_v5, %v158_v0 }
  0x22   :  { %3609 = vmatpush3.bf16.msra.mxu0 %v3608_v36  ;;  %v209_v13 = vld [vmem:[%s5923_s0 + $0x3b8] sm:$0xff]  ;;  %v4379_v14 = vld [vmem:[%s5924_s1 + $0x88] sm:$0xff]  ;;  %v160_v17 = vld [vmem:[%s5923_s0 + $0x230] sm:$0xff]  ;;  %v3684_v20 = vpack.c.bf16 %v191_v9, %v190_v6  ;;  %v3654_v21 = vpack.c.bf16 %v177_v11, %v176_v10 }
  0x23   :  { %3641 = vmatpush3.bf16.msra.mxu1 %v3640_v37  ;;  %3643 = vmatprep.subr.bf16.mxu0 %v3642_v38  ;;  %v4387_v18 = vld [vmem:[%s5924_s1 + $0x98] sm:$0xff]  ;;  %v4392_v19 = vld [vmem:[%s5924_s1 + $0x80] sm:$0xff]  ;;  %v192_v23 = vld [vmem:[%s5923_s0 + $0x330] sm:$0xff]  ;;  %v3686_v25 = vpack.c.bf16 %v209_v13, %v208_v12 }
  0x24   :  { %3675 = vmatprep.subr.bf16.mxu1 %v3674_v42  ;;  %v161_v22 = vld [vmem:[%s5923_s0 + $0x238] sm:$0xff]  ;;  %v4403_v24 = vld [vmem:[%s5924_s1 + $0x90] sm:$0xff]  ;;  %v178_v27 = vld [vmem:[%s5923_s0 + $0x2c0] sm:$0xff] }
  0x25   :  { %283 = vmatmul.mubr.f32.vlgmr.msra.gmra.mrb[0].mxu0 %v4304_v48  ;;  %v193_v26 = vld [vmem:[%s5923_s0 + $0x338] sm:$0xff]  ;;  %v179_v28 = vld [vmem:[%s5923_s0 + $0x2c8] sm:$0xff]  ;;  %v210_v29 = vld [vmem:[%s5923_s0 + $0x3c0] sm:$0xff]  ;;  %v3656_v32 = vpack.c.bf16 %v161_v22, %v160_v17 }
  0x26   :  { %368 = vmatmul.mubr.f32.vlgmr.msra.gmra.mrb[0].mxu1 %v28_v49  ;;  %3645 = vmatpush3.bf16.msra.mxu0 %v3644_v50  ;;  %v211_v30 = vld [vmem:[%s5923_s0 + $0x3c8] sm:$0xff]  ;;  %v162_v33 = vld [vmem:[%s5923_s0 + $0x240] sm:$0xff]  ;;  %v4435_v34 = vld [vmem:[%s5924_s1 + $0xd8] sm:$0xff]  ;;  %v3688_v36 = vpack.c.bf16 %v193_v26, %v192_v23  ;;  %v3658_v37 = vpack.c.bf16 %v179_v28, %v178_v27 }
  0x27   :  { %3677 = vmatpush3.bf16.msra.mxu1 %v3676_v51  ;;  %3647 = vmatprep.subr.bf16.mxu0 %v3646_v52  ;;  %v4426_v31 = vld [vmem:[%s5924_s1 + $0xc8] sm:$0xff]  ;;  %v4440_v35 = vld [vmem:[%s5924_s1 + $0xc0] sm:$0xff]  ;;  %v4451_v40 = vld [vmem:[%s5924_s1 + $0xd0] sm:$0xff]  ;;  %v3690_v41 = vpack.c.bf16 %v211_v30, %v210_v29 }
  0x28   :  { %3679 = vmatprep.subr.bf16.mxu1 %v3678_v56  ;;  %287 = vmatprep.mubr.f32.mxu0 %v4337_v62  ;;  %v163_v38 = vld [vmem:[%s5923_s0 + $0x248] sm:$0xff]  ;;  %v194_v39 = vld [vmem:[%s5923_s0 + $0x340] sm:$0xff]  ;;  %v180_v43 = vld [vmem:[%s5923_s0 + $0x2d0] sm:$0xff] }
  0x29   :  { %372 = vmatprep.mubr.f32.mxu1 %v37_v1  ;;  %288 = vmatmul.mubr.f32.gmra.mrb[2].mxu0 %v4348_v2  ;;  %v195_v42 = vld [vmem:[%s5923_s0 + $0x348] sm:$0xff]  ;;  %v181_v44 = vld [vmem:[%s5923_s0 + $0x2d8] sm:$0xff]  ;;  %v212_v45 = vld [vmem:[%s5923_s0 + $0x3d0] sm:$0xff]  ;;  %v3660_v47 = vpack.c.bf16 %v163_v38, %v162_v33 }
  0x2a   :  { %3649 = vmatpush3.bf16.msra.mxu0 %v3648_v63  ;;  %373 = vmatmul.mubr.f32.gmra.mrb[2].mxu1 %v36_v7  ;;  %v213_v46 = vld [vmem:[%s5923_s0 + $0x3d8] sm:$0xff]  ;;  %v4475_v49 = vld [vmem:[%s5924_s1 + $0x28] sm:$0xff]  ;;  %v3692_v51 = vpack.c.bf16 %v195_v42, %v194_v39  ;;  %v3662_v52 = vpack.c.bf16 %v181_v44, %v180_v43  ;;  %v164_v53 = vld [vmem:[%s5923_s0 + $0x250] sm:$0xff] }
  0x2b   :  { %3681 = vmatpush3.bf16.msra.mxu1 %v3680_v3  ;;  %3651 = vmatprep.subr.bf16.mxu0 %v3650_v4  ;;  %v4480_v50 = vld [vmem:[%s5924_s1 + $0x38] sm:$0xff]  ;;  %v196_v55 = vld [vmem:[%s5923_s0 + $0x350] sm:$0xff]  ;;  %v3694_v56 = vpack.c.bf16 %v213_v46, %v212_v45  ;;  %v182_v58 = vld [vmem:[%s5923_s0 + $0x2e0] sm:$0xff] }
  0x2c   :  { %3683 = vmatprep.subr.bf16.mxu1 %v3682_v8  ;;  %292 = vmatprep.mubr.f32.mxu0 %v4379_v14  ;;  %v165_v54 = vld [vmem:[%s5923_s0 + $0x258] sm:$0xff]  ;;  %v183_v59 = vld [vmem:[%s5923_s0 + $0x2e8] sm:$0xff]  ;;  %v214_v60 = vld [vmem:[%s5923_s0 + $0x3e0] sm:$0xff] }
  0x2d   :  { %377 = vmatprep.mubr.f32.mxu1 %v4387_v18  ;;  %293 = vmatmul.mubr.f32.gmra.mrb[4].mxu0 %v4392_v19  ;;  %v197_v57 = vld [vmem:[%s5923_s0 + $0x358] sm:$0xff]  ;;  %v215_v61 = vld [vmem:[%s5923_s0 + $0x3e8] sm:$0xff]  ;;  %v3664_v63 = vpack.c.bf16 %v165_v54, %v164_v53  ;;  %v3666_v1 = vpack.c.bf16 %v183_v59, %v182_v58  ;;  %v166_v3 = vld [vmem:[%s5923_s0 + $0x260] sm:$0xff] }
  0x2e   :  { %3653 = vmatpush3.bf16.msra.mxu0 %v3652_v15  ;;  %378 = vmatmul.mubr.f32.gmra.mrb[4].mxu1 %v4403_v24  ;;  %v3696_v0 = vpack.c.bf16 %v197_v57, %v196_v55  ;;  %v167_v4 = vld [vmem:[%s5923_s0 + $0x268] sm:$0xff]  ;;  %v198_v5 = vld [vmem:[%s5923_s0 + $0x360] sm:$0xff]  ;;  %v3698_v6 = vpack.c.bf16 %v215_v61, %v214_v60  ;;  %v184_v8 = vld [vmem:[%s5923_s0 + $0x2f0] sm:$0xff] }
  0x2f   :  { %3685 = vmatpush3.bf16.msra.mxu1 %v3684_v20  ;;  %3655 = vmatprep.subr.bf16.mxu0 %v3654_v21  ;;  %v199_v7 = vld [vmem:[%s5923_s0 + $0x368] sm:$0xff]  ;;  %v185_v9 = vld [vmem:[%s5923_s0 + $0x2f8] sm:$0xff]  ;;  %v216_v10 = vld [vmem:[%s5923_s0 + $0x3f0] sm:$0xff]  ;;  %v3668_v12 = vpack.c.bf16 %v167_v4, %v166_v3 }
  0x30   :  { %3687 = vmatprep.subr.bf16.mxu1 %v3686_v25  ;;  %297 = vmatprep.mubr.f32.mxu0 %v4426_v31  ;;  %v217_v11 = vld [vmem:[%s5923_s0 + $0x3f8] sm:$0xff]  ;;  %v3700_v13 = vpack.c.bf16 %v199_v7, %v198_v5  ;;  %v3670_v15 = vpack.c.bf16 %v185_v9, %v184_v8  ;;  %v168_v17 = vld [vmem:[%s5923_s0 + $0x270] sm:$0xff]  ;;  %v4547_v27 = vld [vmem:[%s5924_s1 + $0x20] sm:$0xff] }
  0x31   :  { %382 = vmatprep.mubr.f32.mxu1 %v4435_v34  ;;  %298 = vmatmul.mubr.f32.gmra.mrb[6].mxu0 %v4440_v35  ;;  %v169_v20 = vld [vmem:[%s5923_s0 + $0x278] sm:$0xff]  ;;  %v3702_v21 = vpack.c.bf16 %v217_v11, %v216_v10  ;;  %v200_v22 = vld [vmem:[%s5923_s0 + $0x370] sm:$0xff]  ;;  %v4557_v29 = vld [vmem:[%s5924_s1 + $0x68] sm:$0xff] }
  0x32   :  { %3657 = vmatpush3.bf16.msra.mxu0 %v3656_v32  ;;  %383 = vmatmul.mubr.f32.gmra.mrb[6].mxu1 %v4451_v40  ;;  %v201_v23 = vld [vmem:[%s5923_s0 + $0x378] sm:$0xff]  ;;  %v3672_v25 = vpack.c.bf16 %v169_v20, %v168_v17  ;;  %v4552_v28 = vld [vmem:[%s5924_s1 + $0x30] sm:$0xff]  ;;  %v4570_v32 = vld [vmem:[%s5924_s1 + $0x60] sm:$0xff] }
  0x33   :  { %3689 = vmatpush3.bf16.msra.mxu1 %v3688_v36  ;;  %3659 = vmatprep.subr.bf16.mxu0 %v3658_v37  ;;  %v3704_v26 = vpack.c.bf16 %v201_v23, %v200_v22  ;;  %v4562_v30 = vld [vmem:[%s5924_s1 + $0x78] sm:$0xff]  ;;  %v4576_v33 = vld [vmem:[%s5924_s1 + $0x70] sm:$0xff]  ;;  %v4581_v36 = vld [vmem:[%s5924_s1 + $0xa8] sm:$0xff] }
  0x34   :  { %3691 = vmatprep.subr.bf16.mxu1 %v3690_v41  ;;  %452 = vmatprep.mubr.f32.mxu0 %v4475_v49  ;;  %v4586_v37 = vld [vmem:[%s5924_s1 + $0xb8] sm:$0xff]  ;;  %v4594_v38 = vld [vmem:[%s5924_s1 + $0xa0] sm:$0xff]  ;;  %v4600_v39 = vld [vmem:[%s5924_s1 + $0xb0] sm:$0xff] }
  0x35   :  { %537 = vmatprep.mubr.f32.mxu1 %v4480_v50  ;;  %v4605_v41 = vld [vmem:[%s5924_s1 + $0xe8] sm:$0xff]  ;;  %v4610_v42 = vld [vmem:[%s5924_s1 + $0xf8] sm:$0xff]  ;;  %v4618_v43 = vld [vmem:[%s5924_s1 + $0xe0] sm:$0xff] }
  0x36   :  { %3661 = vmatpush3.bf16.msra.mxu0 %v3660_v47  ;;  %v4624_v44 = vld [vmem:[%s5924_s1 + $0xf0] sm:$0xff]  ;;  %v2682_v45 = vld [vmem:[%s5923_s0 + $0x480] sm:$0xff]  ;;  %v2683_v46 = vld [vmem:[%s5923_s0 + $0x488] sm:$0xff] }
  0x37   :  { %3693 = vmatpush3.bf16.msra.mxu1 %v3692_v51  ;;  %3663 = vmatprep.subr.bf16.mxu0 %v3662_v52  ;;  %v2666_v47 = vld [vmem:[%s5923_s0 + $0x400] sm:$0xff]  ;;  %v3714_v51 = vpack.c.bf16 %v2683_v46, %v2682_v45  ;;  %v2667_v52 = vld [vmem:[%s5923_s0 + $0x408] sm:$0xff]  ;;  %v2685_v54 = vld [vmem:[%s5923_s0 + $0x498] sm:$0xff] }
  0x38   :  { %3695 = vmatprep.subr.bf16.mxu1 %v3694_v56  ;;  %v3716_v53 = vpack.c.bf16 %v2667_v52, %v2666_v47  ;;  %v2668_v56 = vld [vmem:[%s5923_s0 + $0x410] sm:$0xff]  ;;  %v2669_v57 = vld [vmem:[%s5923_s0 + $0x418] sm:$0xff]  ;;  %v2686_v59 = vld [vmem:[%s5923_s0 + $0x4a0] sm:$0xff] }
  0x39   :  { %v3720_v58 = vpack.c.bf16 %v2669_v57, %v2668_v56  ;;  %v2687_v60 = vld [vmem:[%s5923_s0 + $0x4a8] sm:$0xff]  ;;  %v2688_v3 = vld [vmem:[%s5923_s0 + $0x4b0] sm:$0xff]  ;;  %v2689_v4 = vld [vmem:[%s5923_s0 + $0x4b8] sm:$0xff] }
  0x3a   :  { %3665 = vmatpush3.bf16.msra.mxu0 %v3664_v63  ;;  %v3722_v61 = vpack.c.bf16 %v2687_v60, %v2686_v59  ;;  %v2670_v63 = vld [vmem:[%s5923_s0 + $0x420] sm:$0xff]  ;;  %v3726_v5 = vpack.c.bf16 %v2689_v4, %v2688_v3  ;;  %v2673_v7 = vld [vmem:[%s5923_s0 + $0x438] sm:$0xff]  ;;  %v2691_v10 = vld [vmem:[%s5923_s0 + $0x4c8] sm:$0xff] }
  0x3b   :  { %3697 = vmatpush3.bf16.msra.mxu1 %v3696_v0  ;;  %3667 = vmatprep.subr.bf16.mxu0 %v3666_v1  ;;  %v2671_v0 = vld [vmem:[%s5923_s0 + $0x428] sm:$0xff]  ;;  %v2690_v9 = vld [vmem:[%s5923_s0 + $0x4c0] sm:$0xff]  ;;  %v2692_v17 = vld [vmem:[%s5923_s0 + $0x4d0] sm:$0xff] }
  0x3c   :  { %3699 = vmatprep.subr.bf16.mxu1 %v3698_v6  ;;  %v3724_v1 = vpack.c.bf16 %v2671_v0, %v2670_v63  ;;  %v2672_v6 = vld [vmem:[%s5923_s0 + $0x430] sm:$0xff]  ;;  %v3730_v11 = vpack.c.bf16 %v2691_v10, %v2690_v9  ;;  %v2693_v20 = vld [vmem:[%s5923_s0 + $0x4d8] sm:$0xff]  ;;  %v2695_v45 = vld [vmem:[%s5923_s0 + $0x4e8] sm:$0xff] }
  0x3d   :  { %v3728_v8 = vpack.c.bf16 %v2673_v7, %v2672_v6  ;;  %v2676_v22 = vld [vmem:[%s5923_s0 + $0x450] sm:$0xff]  ;;  %v2677_v23 = vld [vmem:[%s5923_s0 + $0x458] sm:$0xff]  ;;  %v2678_v46 = vld [vmem:[%s5923_s0 + $0x460] sm:$0xff] }
  0x3e   :  { %3669 = vmatpush3.bf16.msra.mxu0 %v3668_v12  ;;  %v2674_v12 = vld [vmem:[%s5923_s0 + $0x440] sm:$0xff]  ;;  %v2681_v56 = vld [vmem:[%s5923_s0 + $0x478] sm:$0xff]  ;;  %v2747_v60 = vld [vmem:[%s5923_s0 + $0x688] sm:$0xff] }
  0x3f   :  { %3701 = vmatpush3.bf16.msra.mxu1 %v3700_v13  ;;  %3671 = vmatprep.subr.bf16.mxu0 %v3670_v15  ;;  %v2675_v13 = vld [vmem:[%s5923_s0 + $0x448] sm:$0xff]  ;;  %v4728_v57 = vld [vmem:[%s5925_s2] sm:$0xff]  ;;  %v2748_v3 = vld [vmem:[%s5923_s0 + $0x690] sm:$0xff] }
  0x40   :  { %3703 = vmatprep.subr.bf16.mxu1 %v3702_v21  ;;  %v3732_v15 = vpack.c.bf16 %v2675_v13, %v2674_v12  ;;  %v3734_v21 = vpack.c.bf16 %v2693_v20, %v2692_v17  ;;  %v2746_v59 = vld [vmem:[%s5923_s0 + $0x680] sm:$0xff]  ;;  %v2731_v0 = vld [vmem:[%s5923_s0 + $0x608] sm:$0xff]  ;;  %v2749_v4 = vld [vmem:[%s5923_s0 + $0x698] sm:$0xff] }
  0x41   :  { %v2730_v63 = vld [vmem:[%s5923_s0 + $0x600] sm:$0xff]  ;;  %v2732_v6 = vld [vmem:[%s5923_s0 + $0x610] sm:$0xff] }
  0x42   :  { %3673 = vmatpush3.bf16.msra.mxu0 %v3672_v25  ;;  %v3736_v25 = vpack.c.bf16 %v2677_v23, %v2676_v22  ;;  %v2734_v10 = vld [vmem:[%s5923_s0 + $0x620] sm:$0xff]  ;;  %v2752_v12 = vld [vmem:[%s5923_s0 + $0x6b0] sm:$0xff] }
  0x43   :  { %3705 = vmatpush3.bf16.msra.mxu1 %v3704_v26  ;;  %v2694_v26 = vld [vmem:[%s5923_s0 + $0x4e0] sm:$0xff] }
  0x44   :  { %3715 = vmatprep.subr.bf16.mxu1 %v3714_v51  ;;  %v3738_v47 = vpack.c.bf16 %v2695_v45, %v2694_v26  ;;  %v2679_v51 = vld [vmem:[%s5923_s0 + $0x468] sm:$0xff]  ;;  %v2754_v20 = vld [vmem:[%s5923_s0 + $0x6c0] sm:$0xff]  ;;  %v2740_v45 = vld [vmem:[%s5923_s0 + $0x650] sm:$0xff] }
  0x45   :  { %453 = vmatmul.mubr.f32.vlgmr.msra.gmra.mrb[8].mxu0 %v4547_v27  ;;  %v3740_v52 = vpack.c.bf16 %v2679_v51, %v2678_v46  ;;  %v2738_v22 = vld [vmem:[%s5923_s0 + $0x640] sm:$0xff]  ;;  %v2741_v46 = vld [vmem:[%s5923_s0 + $0x658] sm:$0xff] }
  0x46   :  { %538 = vmatmul.mubr.f32.vlgmr.msra.gmra.mrb[8].mxu1 %v4552_v28  ;;  %457 = vmatprep.mubr.f32.mxu0 %v4557_v29  ;;  %v2758_v51 = vld [vmem:[%s5923_s0 + $0x6e0] sm:$0xff] }
  0x47   :  { %542 = vmatprep.mubr.f32.mxu1 %v4562_v30  ;;  %3717 = vmatpush3.bf16.msra.mxu1 %v3716_v53  ;;  %v2696_v53 = vld [vmem:[%s5923_s0 + $0x4f0] sm:$0xff] }
  0x49   :  { %458 = vmatmul.mubr.f32.gmra.mrb[10].mxu0 %v4570_v32 }
  0x4a   :  { %543 = vmatmul.mubr.f32.gmra.mrb[10].mxu1 %v4576_v33  ;;  %462 = vmatprep.mubr.f32.mxu0 %v4581_v36 }
  0x4b   :  { %547 = vmatprep.mubr.f32.mxu1 %v4586_v37 }
  0x4d   :  { %463 = vmatmul.mubr.f32.gmra.mrb[12].mxu0 %v4594_v38 }
  0x4e   :  { %548 = vmatmul.mubr.f32.gmra.mrb[12].mxu1 %v4600_v39  ;;  %467 = vmatprep.mubr.f32.mxu0 %v4605_v41 }
  0x4f   :  { %552 = vmatprep.mubr.f32.mxu1 %v4610_v42 }
  0x51   :  { %468 = vmatmul.mubr.f32.gmra.mrb[14].mxu0 %v4618_v43 }
  0x52   :  { %553 = vmatmul.mubr.f32.gmra.mrb[14].mxu1 %v4624_v44  ;;  %3394 = vmatprep.mubr.msk.f32.mxu0 %vm642_vm0, %v4728_v57 }
  0x53   :  { %1046 = vmatprep.mubr.f32.mxu1 %v4232_v16  ;;  %v2684_v16 = vld [vmem:[%s5923_s0 + $0x490] sm:$0xff] }
  0x54   :  { %v3718_v55 = vpack.c.bf16 %v2685_v54, %v2684_v16  ;;  %v2697_v16 = vld [vmem:[%s5923_s0 + $0x4f8] sm:$0xff] }
  0x55   :  { %v3742_v54 = vpack.c.bf16 %v2697_v16, %v2696_v53  ;;  %v2742_v16 = vld [vmem:[%s5923_s0 + $0x660] sm:$0xff] }
  0x56   :  { %3719 = vmatprep.subr.bf16.mxu1 %v3718_v55  ;;  %v2680_v55 = vld [vmem:[%s5923_s0 + $0x470] sm:$0xff] }
  0x57   :  { %3721 = vmatpush3.bf16.msra.mxu1 %v3720_v58  ;;  %v3744_v58 = vpack.c.bf16 %v2681_v56, %v2680_v55  ;;  %v2760_v56 = vld [vmem:[%s5923_s0 + $0x6f0] sm:$0xff] }
  0x58   :  { %3723 = vmatprep.subr.bf16.mxu1 %v3722_v61  ;;  %v3778_v61 = vpack.c.bf16 %v2747_v60, %v2746_v59  ;;  %v2744_v60 = vld [vmem:[%s5923_s0 + $0x670] sm:$0xff] }
  0x5b   :  { %3725 = vmatpush3.bf16.msra.mxu1 %v3724_v1  ;;  %v3780_v1 = vpack.c.bf16 %v2731_v0, %v2730_v63  ;;  %v4845_v0 = vld [vmem:[%s5925_s2 + $0x20] sm:$0xff] }
  0x5c   :  { %3727 = vmatprep.subr.bf16.mxu1 %v3726_v5  ;;  %v3782_v5 = vpack.c.bf16 %v2749_v4, %v2748_v3 }
  0x5f   :  { %3729 = vmatpush3.bf16.msra.mxu1 %v3728_v8  ;;  %v2750_v8 = vld [vmem:[%s5923_s0 + $0x6a0] sm:$0xff] }
  0x60   :  { %3731 = vmatprep.subr.bf16.mxu1 %v3730_v11 }
  0x63   :  { %3733 = vmatpush3.bf16.msra.mxu1 %v3732_v15  ;;  %v2736_v15 = vld [vmem:[%s5923_s0 + $0x630] sm:$0xff] }
  0x64   :  { %3735 = vmatprep.subr.bf16.mxu1 %v3734_v21 }
  0x67   :  { %3737 = vmatpush3.bf16.msra.mxu1 %v3736_v25  ;;  %v2756_v25 = vld [vmem:[%s5923_s0 + $0x6d0] sm:$0xff] }
  0x68   :  { %3739 = vmatprep.subr.bf16.mxu1 %v3738_v47  ;;  %v3800_v47 = vpack.c.bf16 %v2741_v46, %v2740_v45  ;;  %v81_v45 = vld [vmem:[%s5926_s4 + $0x38] sm:$0xff]  ;;  %v80_v46 = vld [vmem:[%s5926_s4 + $0x30] sm:$0xff] }
  0x6b   :  { %3741 = vmatpush3.bf16.msra.mxu1 %v3740_v52  ;;  %v2759_v52 = vld [vmem:[%s5923_s0 + $0x6e8] sm:$0xff] }
  0x6c   :  { %3743 = vmatprep.subr.bf16.mxu1 %v3742_v54  ;;  %v3802_v53 = vpack.c.bf16 %v2759_v52, %v2758_v51  ;;  %v2743_v54 = vld [vmem:[%s5923_s0 + $0x668] sm:$0xff]  ;;  %v82_v51 = vld [vmem:[%s5926_s4 + $0x40] sm:$0xff] }
  0x6d   :  { %v3804_v55 = vpack.c.bf16 %v2743_v54, %v2742_v16  ;;  %v87_v52 = vld [vmem:[%s5926_s4 + $0x68] sm:$0xff]  ;;  %v85_v16 = vld [vmem:[%s5926_s4 + $0x58] sm:$0xff]  ;;  %v84_v54 = vld [vmem:[%s5926_s4 + $0x50] sm:$0xff] }
  0x6f   :  { %3745 = vmatpush3.bf16.msra.mxu1 %v3744_v58  ;;  %v2761_v58 = vld [vmem:[%s5923_s0 + $0x6f8] sm:$0xff] }
  0x70   :  { %3779 = vmatprep.subr.bf16.mxu1 %v3778_v61  ;;  %v3806_v59 = vpack.c.bf16 %v2761_v58, %v2760_v56  ;;  %v2745_v61 = vld [vmem:[%s5923_s0 + $0x678] sm:$0xff] }
  0x71   :  { %v3808_v63 = vpack.c.bf16 %v2745_v61, %v2744_v60 }
  0x72   :  { %1047 = vmatmul.mubr.f32.vlgmr.msra.gmra.mrb[16].mxu1 %v4304_v48  ;;  %v2733_v48 = vld [vmem:[%s5923_s0 + $0x618] sm:$0xff] }
  0x73   :  { %3781 = vmatpush3.bf16.msra.mxu1 %v3780_v1  ;;  %1051 = vmatprep.mubr.f32.mxu1 %v4337_v62  ;;  %v3784_v7 = vpack.c.bf16 %v2733_v48, %v2732_v6  ;;  %v2751_v62 = vld [vmem:[%s5923_s0 + $0x6a8] sm:$0xff] }
  0x74   :  { %3783 = vmatprep.subr.bf16.mxu1 %v3782_v5  ;;  %v3786_v9 = vpack.c.bf16 %v2751_v62, %v2750_v8 }
  0x76   :  { %1052 = vmatmul.mubr.f32.gmra.mrb[18].mxu1 %v4348_v2  ;;  %v2735_v2 = vld [vmem:[%s5923_s0 + $0x628] sm:$0xff] }
  0x77   :  { %3785 = vmatpush3.bf16.msra.mxu1 %v3784_v7  ;;  %1056 = vmatprep.mubr.f32.mxu1 %v4379_v14  ;;  %v3788_v11 = vpack.c.bf16 %v2735_v2, %v2734_v10  ;;  %v2753_v14 = vld [vmem:[%s5923_s0 + $0x6b8] sm:$0xff]  ;;  %v4022_v10 = vmov 0   ;;  %v78_v2 = vld [vmem:[%s5926_s4 + $0x20] sm:$0xff] }
  0x78   :  { %3787 = vmatprep.subr.bf16.mxu1 %v3786_v9  ;;  %v3790_v13 = vpack.c.bf16 %v2753_v14, %v2752_v12  ;;  %3889 = vset.pattern.permute.xlu1 %v4022_v10 }
  0x79   :  { %3888 = vset.pattern.permute.xlu0 %v4022_v10  ;;  %584 = vperm.xlu1 %3889, %v78_v2  }
  0x7a   :  { %1057 = vmatmul.mubr.f32.gmra.mrb[20].mxu1 %v4392_v19  ;;  %v2737_v19 = vld [vmem:[%s5923_s0 + $0x638] sm:$0xff] }
  0x7b   :  { %3789 = vmatpush3.bf16.msra.mxu1 %v3788_v11  ;;  %1061 = vmatprep.mubr.f32.mxu1 %v4426_v31  ;;  %v3792_v17 = vpack.c.bf16 %v2737_v19, %v2736_v15  ;;  %v2755_v31 = vld [vmem:[%s5923_s0 + $0x6c8] sm:$0xff]  ;;  %v74_v11 = vld [vmem:[%s5926_s4] sm:$0xff] }
  0x7c   :  { %3791 = vmatprep.subr.bf16.mxu1 %v3790_v13  ;;  %v3794_v21 = vpack.c.bf16 %v2755_v31, %v2754_v20  ;;  %564 = vperm.xlu0 %3888, %v74_v11   ;;  %v79_v15 = vld [vmem:[%s5926_s4 + $0x28] sm:$0xff] }
  0x7d   :  { %v75_v19 = vld [vmem:[%s5926_s4 + $0x8] sm:$0xff]  ;;  %589 = vperm.xlu1 %3889, %v79_v15  }
  0x7e   :  { %1062 = vmatmul.mubr.f32.gmra.mrb[22].mxu1 %v4440_v35  ;;  %v2739_v35 = vld [vmem:[%s5923_s0 + $0x648] sm:$0xff] }
  0x7f   :  { %3793 = vmatpush3.bf16.msra.mxu1 %v3792_v17  ;;  %1216 = vmatprep.mubr.f32.mxu1 %v4475_v49  ;;  %v3796_v23 = vpack.c.bf16 %v2739_v35, %v2738_v22  ;;  %v2757_v49 = vld [vmem:[%s5923_s0 + $0x6d8] sm:$0xff] }
  0x80   :  { %3795 = vmatprep.subr.bf16.mxu1 %v3794_v21  ;;  %v3798_v26 = vpack.c.bf16 %v2757_v49, %v2756_v25  ;;  %569 = vperm.xlu0 %3888, %v75_v19   ;;  %v77_v25 = vld [vmem:[%s5926_s4 + $0x18] sm:$0xff]  ;;  %v76_v49 = vld [vmem:[%s5926_s4 + $0x10] sm:$0xff] }
  0x81   :  { %579 = vperm.xlu1 %3889, %v77_v25  }
  0x83   :  { %3797 = vmatpush3.bf16.msra.mxu1 %v3796_v23 }
  0x84   :  { %3799 = vmatprep.subr.bf16.mxu1 %v3798_v26  ;;  %574 = vperm.xlu0 %3888, %v76_v49  }
  0x85   :  { %599 = vperm.xlu1 %3889, %v81_v45  }
  0x87   :  { %3801 = vmatpush3.bf16.msra.mxu1 %v3800_v47  ;;  %v83_v47 = vld [vmem:[%s5926_s4 + $0x48] sm:$0xff] }
  0x88   :  { %3803 = vmatprep.subr.bf16.mxu1 %v3802_v53  ;;  %594 = vperm.xlu0 %3888, %v80_v46   ;;  %v86_v53 = vld [vmem:[%s5926_s4 + $0x60] sm:$0xff] }
  0x89   :  { %609 = vperm.xlu1 %3889, %v83_v47   ;;  %v2698_v47 = vld [vmem:[%s5923_s0 + $0x500] sm:$0xff] }
  0x8b   :  { %3805 = vmatpush3.bf16.msra.mxu1 %v3804_v55 }
  0x8c   :  { %3807 = vmatprep.subr.bf16.mxu1 %v3806_v59  ;;  %604 = vperm.xlu0 %3888, %v82_v51   ;;  %v2716_v51 = vld [vmem:[%s5923_s0 + $0x590] sm:$0xff] }
  0x8d   :  { %629 = vperm.xlu1 %3889, %v87_v52   ;;  %v2717_v52 = vld [vmem:[%s5923_s0 + $0x598] sm:$0xff] }
  0x8f   :  { %3809 = vmatpush3.bf16.msra.mxu1 %v3808_v63  ;;  %v89_v63 = vld [vmem:[%s5926_s4 + $0x78] sm:$0xff] }
  0x90   :  { %624 = vperm.xlu0 %3888, %v86_v53   ;;  %v4922_v53 = vld [vmem:[%s5925_s2 + $0x8] sm:$0xff] }
  0x91   :  { %619 = vperm.xlu1 %3889, %v85_v16  }
  0x92   :  { %1217 = vmatmul.mubr.f32.vlgmr.msra.gmra.mrb[24].mxu1 %v4547_v27 }
  0x93   :  { %1221 = vmatprep.mubr.f32.mxu1 %v4557_v29 }
  0x94   :  { %614 = vperm.xlu0 %3888, %v84_v54   ;;  %v4927_v54 = vld [vmem:[%s5925_s2 + $0x10] sm:$0xff] }
  0x95   :  { %639 = vperm.xlu1 %3889, %v89_v63  }
  0x96   :  { %1222 = vmatmul.mubr.f32.gmra.mrb[26].mxu1 %v4570_v32 }
  0x97   :  { %1226 = vmatprep.mubr.f32.mxu1 %v4581_v36 }
  0x9a   :  { %1227 = vmatmul.mubr.f32.gmra.mrb[28].mxu1 %v4594_v38 }
  0x9b   :  { %1231 = vmatprep.mubr.f32.mxu1 %v4605_v41 }
  0x9e   :  { %1232 = vmatmul.mubr.f32.gmra.mrb[30].mxu1 %v4618_v43 }
  0x9f   :  { %3432 = vmatprep.mubr.msk.f32.mxu1 %vm642_vm0, %v4845_v0 }
  0xf8   :  { %v2946_v27 = vpop.f32.mrb[0].mxu0 }
  0xf9   :  { %v2990_v29 = vpop.f32.mrb[0].mxu1  ;;  %v2947_v1 = vpop.f32.mrb[1].mxu0 }
  0xfa   :  { %v2948_v32 = vadd.f32 %v2947_v1, %v2946_v27  ;;  %v2991_v3 = vpop.f32.mrb[1].mxu1  ;;  %v88_v27 = vld [vmem:[%s5926_s4 + $0x70] sm:$0xff] }
  0xfb   :  { %v2992_v36 = vadd.f32 %v2991_v3, %v2990_v29  ;;  %634 = vperm.xlu0 %3888, %v88_v27  }
  0xfc   :  { %v2949_v4 = vpop.f32.mrb[2].mxu0 }
  0xfd   :  { %v370_v38 = vadd.f32 %v2992_v36, %v2948_v32  ;;  %v2993_v5 = vpop.f32.mrb[2].mxu1  ;;  %v2950_v41 = vpop.f32.mrb[3].mxu0 }
  0xfe   :  { %v2951_v6 = vadd.f32 %v2950_v41, %v2949_v4  ;;  %v2994_v48 = vpop.f32.mrb[3].mxu1 }
  0xff   :  { %v2995_v7 = vadd.f32 %v2994_v48, %v2993_v5 }
 0x100   :  { %v2952_v8 = vpop.f32.mrb[4].mxu0 }
 0x101   :  { %v4850_v62 = vadd.f32 %v2995_v7, %v2951_v6  ;;  %v2996_v43 = vpop.f32.mrb[4].mxu1  ;;  %v2953_v9 = vpop.f32.mrb[5].mxu0 }
 0x102   :  { %v2954_v12 = vadd.f32 %v2953_v9, %v2952_v8  ;;  %v2997_v14 = vpop.f32.mrb[5].mxu1 }
 0x103   :  { %v2998_v13 = vadd.f32 %v2997_v14, %v2996_v43 }
 0x104   :  { %v2955_v17 = vpop.f32.mrb[6].mxu0 }
 0x105   :  { %v380_v20 = vadd.f32 %v2998_v13, %v2954_v12  ;;  %v2999_v31 = vpop.f32.mrb[6].mxu1  ;;  %v2956_v21 = vpop.f32.mrb[7].mxu0 }
 0x106   :  { %v2957_v22 = vadd.f32 %v2956_v21, %v2955_v17  ;;  %v3000_v35 = vpop.f32.mrb[7].mxu1 }
 0x107   :  { %v3001_v23 = vadd.f32 %v3000_v35, %v2999_v31 }
 0x109   :  { %v385_v26 = vadd.f32 %v3001_v23, %v2957_v22  ;;  %v2714_v23 = vld [vmem:[%s5923_s0 + $0x580] sm:$0xff] }
 0x118   :  { %v3034_v55 = vpop.f32.mrb[8].mxu0 }
 0x119   :  { %v3035_v56 = vpop.f32.mrb[9].mxu0  ;;  %v3078_v58 = vpop.f32.mrb[8].mxu1 }
 0x11a   :  { %v3036_v59 = vadd.f32 %v3035_v56, %v3034_v55  ;;  %v3079_v60 = vpop.f32.mrb[9].mxu1  ;;  %v3750_v55 = vpack.c.bf16 %v2717_v52, %v2716_v51  ;;  %v2700_v56 = vld [vmem:[%s5923_s0 + $0x510] sm:$0xff] }
 0x11b   :  { %v3080_v61 = vadd.f32 %v3079_v60, %v3078_v58  ;;  %v2701_v58 = vld [vmem:[%s5923_s0 + $0x518] sm:$0xff]  ;;  %v2719_v60 = vld [vmem:[%s5923_s0 + $0x5a8] sm:$0xff]  ;;  %v5078_v51 = vld [vmem:[%s5925_s2 + $0x70] sm:$0xff] }
 0x11c   :  { %v455_v29 = vadd.f32 %v3036_v59, %v370_v38  ;;  %v3037_v1 = vpop.f32.mrb[10].mxu0  ;;  %v2718_v59 = vld [vmem:[%s5923_s0 + $0x5a0] sm:$0xff]  ;;  %v3752_v63 = vpack.c.bf16 %v2701_v58, %v2700_v56  ;;  %v2779_v58 = vld [vmem:[%s5923_s0 + $0x788] sm:$0xff] }
 0x11d   :  { %v3038_v32 = vpop.f32.mrb[11].mxu0  ;;  %v3081_v3 = vpop.f32.mrb[10].mxu1  ;;  %v3754_v27 = vpack.c.bf16 %v2719_v60, %v2718_v59  ;;  %v2778_v56 = vld [vmem:[%s5923_s0 + $0x780] sm:$0xff]  ;;  %v5099_v59 = vld [vmem:[%s5925_s2 + $0x78] sm:$0xff] }
 0x11e   :  { %v540_v36 = vadd.f32 %v3080_v61, %v455_v29  ;;  %v3039_v4 = vadd.f32 %v3038_v32, %v3037_v1  ;;  %v3082_v5 = vpop.f32.mrb[11].mxu1  ;;  %v4948_v61 = vld [vmem:[%s5925_s2 + $0x18] sm:$0xff]  ;;  %v2702_v29 = vld [vmem:[%s5923_s0 + $0x520] sm:$0xff]  ;;  %v2703_v1 = vld [vmem:[%s5923_s0 + $0x528] sm:$0xff] }
 0x11f   :  { %v3083_v41 = vadd.f32 %v3082_v5, %v3081_v3  ;;  %v2720_v32 = vld [vmem:[%s5923_s0 + $0x5b0] sm:$0xff]  ;;  %v2721_v3 = vld [vmem:[%s5923_s0 + $0x5b8] sm:$0xff] }
 0x120   :  { %v460_v6 = vadd.f32 %v3039_v4, %v4850_v62  ;;  %v3040_v48 = vpop.f32.mrb[12].mxu0  ;;  %v558_v11 = vmax.f32 %v540_v36, 0.0  ;;  %v4969_v36 = vld [vmem:[%s5925_s2 + $0x28] sm:$0xff]  ;;  %v3756_v4 = vpack.c.bf16 %v2703_v1, %v2702_v29  ;;  %v4974_v5 = vld [vmem:[%s5925_s2 + $0x30] sm:$0xff] }
 0x121   :  { %v3041_v7 = vpop.f32.mrb[13].mxu0  ;;  %v3084_v8 = vpop.f32.mrb[12].mxu1  ;;  %v2763_v29 = vld [vmem:[%s5923_s0 + $0x708] sm:$0xff]  ;;  %v2780_v1 = vld [vmem:[%s5923_s0 + $0x790] sm:$0xff] }
 0x122   :  { %v545_v43 = vadd.f32 %v3083_v41, %v460_v6  ;;  %v3042_v9 = vadd.f32 %v3041_v7, %v3040_v48  ;;  %v3085_v10 = vpop.f32.mrb[13].mxu1  ;;  %v3758_v41 = vpack.c.bf16 %v2721_v3, %v2720_v32  ;;  %v2704_v6 = vld [vmem:[%s5923_s0 + $0x530] sm:$0xff]  ;;  %v2722_v48 = vld [vmem:[%s5923_s0 + $0x5c0] sm:$0xff]  ;;  %v2723_v7 = vld [vmem:[%s5923_s0 + $0x5c8] sm:$0xff] }
 0x123   :  { %v3086_v2 = vadd.f32 %v3085_v10, %v3084_v8  ;;  %v4995_v8 = vld [vmem:[%s5925_s2 + $0x38] sm:$0xff]  ;;  %v3762_v10 = vpack.c.bf16 %v2723_v7, %v2722_v48  ;;  %v2782_v48 = vld [vmem:[%s5923_s0 + $0x7a0] sm:$0xff]  ;;  %v2783_v7 = vld [vmem:[%s5923_s0 + $0x7a8] sm:$0xff] }
 0x124   :  { %v559_v38 = vmax.f32 %v545_v43, 0.0  ;;  %v465_v12 = vadd.f32 %v3042_v9, %v380_v20  ;;  %v3043_v14 = vpop.f32.mrb[14].mxu0  ;;  %v2715_v20 = vld [vmem:[%s5923_s0 + $0x588] sm:$0xff]  ;;  %v5000_v9 = vld [vmem:[%s5925_s2 + $0x40] sm:$0xff]  ;;  %v2781_v32 = vld [vmem:[%s5923_s0 + $0x798] sm:$0xff] }
 0x125   :  { %v3044_v13 = vpop.f32.mrb[15].mxu0  ;;  %v3087_v15 = vpop.f32.mrb[14].mxu1  ;;  %v3746_v46 = vpack.c.bf16 %v2715_v20, %v2714_v23  ;;  %v5052_v23 = vld [vmem:[%s5925_s2 + $0x60] sm:$0xff]  ;;  %v4018_v3 = vld [vmem:[%s5924_s1 + $0x18] sm:$0xff] }
 0x126   :  { %v550_v19 = vadd.f32 %v3086_v2, %v465_v12  ;;  %v3045_v17 = vadd.f32 %v3044_v13, %v3043_v14  ;;  %v3088_v31 = vpop.f32.mrb[15].mxu1  ;;  %v3706_v21 = vpack.c.bf16 %v559_v38, %v558_v11  ;;  %v2706_v2 = vld [vmem:[%s5923_s0 + $0x540] sm:$0xff]  ;;  %v2707_v11 = vld [vmem:[%s5923_s0 + $0x548] sm:$0xff]  ;;  %v2724_v38 = vld [vmem:[%s5923_s0 + $0x5d0] sm:$0xff] }
 0x127   :  { %v3089_v22 = vadd.f32 %v3088_v31, %v3087_v15  ;;  %v2725_v12 = vld [vmem:[%s5923_s0 + $0x5d8] sm:$0xff]  ;;  %v5021_v14 = vld [vmem:[%s5925_s2 + $0x48] sm:$0xff]  ;;  %v3764_v13 = vpack.c.bf16 %v2707_v11, %v2706_v2  ;;  %v5026_v15 = vld [vmem:[%s5925_s2 + $0x50] sm:$0xff]  ;;  %v3818_v11 = vpack.c.bf16 %v2783_v7, %v2782_v48 }
 0x128   :  { %v470_v35 = vadd.f32 %v3045_v17, %v385_v26  ;;  %3707 = vmatprep.subr.bf16.mxu0 %v3706_v21  ;;  %v560_v25 = vmax.f32 %v550_v19, 0.0  ;;  %v2699_v26 = vld [vmem:[%s5923_s0 + $0x508] sm:$0xff]  ;;  %v3766_v19 = vpack.c.bf16 %v2725_v12, %v2724_v38  ;;  %v2708_v17 = vld [vmem:[%s5923_s0 + $0x550] sm:$0xff]  ;;  %v2709_v31 = vld [vmem:[%s5923_s0 + $0x558] sm:$0xff] }
 0x129   :  { %3709 = vmatpush3.bf16.msra.mxu0 %v3706_v21  ;;  %v3748_v16 = vpack.c.bf16 %v2699_v26, %v2698_v47  ;;  %v2726_v21 = vld [vmem:[%s5923_s0 + $0x5e0] sm:$0xff]  ;;  %v5073_v47 = vld [vmem:[%s5925_s2 + $0x68] sm:$0xff]  ;;  %v4020_v2 = vld [vmem:[%s5924_s1 + $0x58] sm:$0xff] }
 0x12a   :  { %v555_v62 = vadd.f32 %v3089_v22, %v470_v35  ;;  %v2727_v22 = vld [vmem:[%s5923_s0 + $0x5e8] sm:$0xff]  ;;  %v5047_v35 = vld [vmem:[%s5925_s2 + $0x58] sm:$0xff]  ;;  %v2766_v38 = vld [vmem:[%s5923_s0 + $0x720] sm:$0xff] }
 0x12b   :  { %v3770_v20 = vpack.c.bf16 %v2727_v22, %v2726_v21  ;;  %v2767_v12 = vld [vmem:[%s5923_s0 + $0x728] sm:$0xff]  ;;  %v2768_v22 = vld [vmem:[%s5923_s0 + $0x730] sm:$0xff] }
 0x12c   :  { %v561_v49 = vmax.f32 %v555_v62, 0.0  ;;  %v3768_v62 = vpack.c.bf16 %v2709_v31, %v2708_v17  ;;  %v4021_v17 = vld [vmem:[%s5924_s1 + $0x50] sm:$0xff]  ;;  %v3820_v31 = vpack.c.bf16 %v2767_v12, %v2766_v38 }
 0x12e   :  { %v3710_v45 = vpack.c.bf16 %v561_v49, %v560_v25  ;;  %v2710_v25 = vld [vmem:[%s5923_s0 + $0x560] sm:$0xff]  ;;  %v2711_v49 = vld [vmem:[%s5923_s0 + $0x568] sm:$0xff] }
 0x12f   :  { %v3772_v26 = vpack.c.bf16 %v2711_v49, %v2710_v25  ;;  %v2787_v25 = vld [vmem:[%s5923_s0 + $0x7c8] sm:$0xff] }
 0x130   :  { %3711 = vmatprep.subr.bf16.mxu0 %v3710_v45 }
 0x131   :  { %3713 = vmatpush3.bf16.msra.mxu0 %v3710_v45  ;;  %v2728_v45 = vld [vmem:[%s5923_s0 + $0x5f0] sm:$0xff] }
 0x132   :  { %3747 = vmatprep.subr.bf16.mxu0 %v3746_v46  ;;  %v2729_v46 = vld [vmem:[%s5923_s0 + $0x5f8] sm:$0xff] }
 0x133   :  { %v3774_v52 = vpack.c.bf16 %v2729_v46, %v2728_v45  ;;  %v2770_v45 = vld [vmem:[%s5923_s0 + $0x740] sm:$0xff]  ;;  %v2771_v46 = vld [vmem:[%s5923_s0 + $0x748] sm:$0xff] }
 0x134   :  { %3395 = vmatmul.mubr.msk.f32.vlgmr.msra.gmra.mrb[16].mxu0 %vm642_vm0, %v4922_v53 }
 0x135   :  { %3749 = vmatpush3.bf16.msra.mxu0 %v3748_v16  ;;  %3397 = vmatprep.mubr.msk.f32.mxu0 %vm642_vm0, %v4927_v54  ;;  %v2712_v16 = vld [vmem:[%s5923_s0 + $0x570] sm:$0xff] }
 0x136   :  { %3751 = vmatprep.subr.bf16.mxu0 %v3750_v55  ;;  %v2713_v55 = vld [vmem:[%s5923_s0 + $0x578] sm:$0xff] }
 0x137   :  { %v3776_v60 = vpack.c.bf16 %v2713_v55, %v2712_v16  ;;  %v2772_v16 = vld [vmem:[%s5923_s0 + $0x750] sm:$0xff]  ;;  %v2773_v55 = vld [vmem:[%s5923_s0 + $0x758] sm:$0xff] }
 0x138   :  { %3398 = vmatmul.mubr.msk.f32.gmra.mrb[18].mxu0 %vm642_vm0, %v4948_v61 }
 0x139   :  { %3753 = vmatpush3.bf16.msra.mxu0 %v3752_v63  ;;  %3400 = vmatprep.mubr.msk.f32.mxu0 %vm642_vm0, %v4845_v0  ;;  %v2705_v0 = vld [vmem:[%s5923_s0 + $0x538] sm:$0xff]  ;;  %v3810_v63 = vpack.c.bf16 %v2779_v58, %v2778_v56  ;;  %v2790_v56 = vld [vmem:[%s5923_s0 + $0x7e0] sm:$0xff] }
 0x13a   :  { %3755 = vmatprep.subr.bf16.mxu0 %v3754_v27  ;;  %v3760_v43 = vpack.c.bf16 %v2705_v0, %v2704_v6  ;;  %v2762_v27 = vld [vmem:[%s5923_s0 + $0x700] sm:$0xff]  ;;  %v2764_v6 = vld [vmem:[%s5923_s0 + $0x710] sm:$0xff]  ;;  %v2765_v0 = vld [vmem:[%s5923_s0 + $0x718] sm:$0xff] }
 0x13c   :  { %3401 = vmatmul.mubr.msk.f32.gmra.mrb[20].mxu0 %vm642_vm0, %v4969_v36 }
 0x13d   :  { %3757 = vmatpush3.bf16.msra.mxu0 %v3756_v4  ;;  %3403 = vmatprep.mubr.msk.f32.mxu0 %vm642_vm0, %v4974_v5  ;;  %v3812_v4 = vpack.c.bf16 %v2763_v29, %v2762_v27  ;;  %v2792_v27 = vld [vmem:[%s5923_s0 + $0x7f0] sm:$0xff]  ;;  %v2793_v29 = vld [vmem:[%s5923_s0 + $0x7f8] sm:$0xff] }
 0x13e   :  { %3759 = vmatprep.subr.bf16.mxu0 %v3758_v41  ;;  %v3814_v41 = vpack.c.bf16 %v2781_v32, %v2780_v1  ;;  %v3838_v32 = vpack.c.bf16 %v2793_v29, %v2792_v27  ;;  %v2176_v29 = vld [vmem:[%s5927_s6 + $0x28] sm:$0xff] }
 0x140   :  { %3404 = vmatmul.mubr.msk.f32.gmra.mrb[22].mxu0 %vm642_vm0, %v4995_v8 }
 0x141   :  { %3761 = vmatpush3.bf16.msra.mxu0 %v3760_v43  ;;  %3406 = vmatprep.mubr.msk.f32.mxu0 %vm642_vm0, %v5000_v9  ;;  %v4019_v43 = vld [vmem:[%s5924_s1 + $0x10] sm:$0xff] }
 0x142   :  { %3763 = vmatprep.subr.bf16.mxu0 %v3762_v10  ;;  %v3816_v10 = vpack.c.bf16 %v2765_v0, %v2764_v6 }
 0x144   :  { %3407 = vmatmul.mubr.msk.f32.gmra.mrb[24].mxu0 %vm642_vm0, %v5021_v14 }
 0x145   :  { %3765 = vmatpush3.bf16.msra.mxu0 %v3764_v13  ;;  %3409 = vmatprep.mubr.msk.f32.mxu0 %vm642_vm0, %v5026_v15  ;;  %v2784_v13 = vld [vmem:[%s5923_s0 + $0x7b0] sm:$0xff]  ;;  %v3142_v6 = vpop.f32.mrb[16].mxu1 }
 0x146   :  { %3767 = vmatprep.subr.bf16.mxu0 %v3766_v19  ;;  %v2785_v19 = vld [vmem:[%s5923_s0 + $0x7b8] sm:$0xff]  ;;  %v3143_v0 = vpop.f32.mrb[17].mxu1 }
 0x147   :  { %v3822_v21 = vpack.c.bf16 %v2785_v19, %v2784_v13  ;;  %v5219_v48 = vadd.f32 %v3143_v0, %v3142_v6 }
 0x148   :  { %3410 = vmatmul.mubr.msk.f32.gmra.mrb[26].mxu0 %vm642_vm0, %v5047_v35 }
 0x149   :  { %3769 = vmatpush3.bf16.msra.mxu0 %v3768_v62  ;;  %3412 = vmatprep.mubr.msk.f32.mxu0 %vm642_vm0, %v5052_v23  ;;  %v2769_v62 = vld [vmem:[%s5923_s0 + $0x738] sm:$0xff] }
 0x14a   :  { %3771 = vmatprep.subr.bf16.mxu0 %v3770_v20  ;;  %v2786_v20 = vld [vmem:[%s5923_s0 + $0x7c0] sm:$0xff] }
 0x14b   :  { %v3826_v49 = vpack.c.bf16 %v2787_v25, %v2786_v20  ;;  %v5243_v20 = vpop.permute.xlu1 %584  ;;  %v5245_v25 = vpop.permute.xlu0 %564 }
 0x14c   :  { %3413 = vmatmul.mubr.msk.f32.gmra.mrb[28].mxu0 %vm642_vm0, %v5073_v47 }
 0x14d   :  { %3773 = vmatpush3.bf16.msra.mxu0 %v3772_v26  ;;  %3415 = vmatprep.mubr.msk.f32.mxu0 %vm642_vm0, %v5078_v51  ;;  %v2788_v26 = vld [vmem:[%s5923_s0 + $0x7d0] sm:$0xff] }
 0x14e   :  { %3775 = vmatprep.subr.bf16.mxu0 %v3774_v52 }
 0x150   :  { %3416 = vmatmul.mubr.msk.f32.gmra.mrb[30].mxu0 %vm642_vm0, %v5099_v59 }
 0x151   :  { %3777 = vmatpush3.bf16.msra.mxu0 %v3776_v60  ;;  %1131 = vmatprep.mubr.f32.mxu0 %v4018_v3  ;;  %v2774_v60 = vld [vmem:[%s5923_s0 + $0x760] sm:$0xff]  ;;  %v2776_v3 = vld [vmem:[%s5923_s0 + $0x770] sm:$0xff] }
 0x152   :  { %3811 = vmatprep.subr.bf16.mxu0 %v3810_v63  ;;  %v2775_v63 = vld [vmem:[%s5923_s0 + $0x768] sm:$0xff] }
 0x153   :  { %v3836_v1 = vpack.c.bf16 %v2775_v63, %v2774_v60 }
 0x154   :  { %1132 = vmatmul.mubr.f32.vlgmr.msra.gmra.mrb[32].mxu0 %v4019_v43 }
 0x155   :  { %3813 = vmatpush3.bf16.msra.mxu0 %v3812_v4  ;;  %1136 = vmatprep.mubr.f32.mxu0 %v4020_v2  ;;  %v2777_v4 = vld [vmem:[%s5923_s0 + $0x778] sm:$0xff] }
 0x156   :  { %3815 = vmatprep.subr.bf16.mxu0 %v3814_v41  ;;  %v3840_v41 = vpack.c.bf16 %v2777_v4, %v2776_v3 }
 0x158   :  { %1137 = vmatmul.mubr.f32.gmra.mrb[34].mxu0 %v4021_v17 }
 0x159   :  { %3817 = vmatpush3.bf16.msra.mxu0 %v3816_v10  ;;  %1141 = vmatprep.mubr.f32.mxu0 %v4387_v18  ;;  %v3824_v18 = vpack.c.bf16 %v2769_v62, %v2768_v22  ;;  %v4023_v62 = vmov 0.0  }
 0x15a   :  { %3819 = vmatprep.subr.bf16.mxu0 %v3818_v11  ;;  %1488 = vst.msk [vmem:[#allocation4] sm:$0xff] %vm836_vm1, %v4023_v62  ;;  %1489 = vst.msk [vmem:[#allocation4 + $0x8] sm:$0xff] %vm836_vm1, %v4023_v62 }
 0x15b   :  { %1490 = vst.msk [vmem:[#allocation4 + $0x10] sm:$0xff] %vm836_vm1, %v4023_v62  ;;  %1491 = vst.msk [vmem:[#allocation4 + $0x18] sm:$0xff] %vm836_vm1, %v4023_v62 }
 0x15c   :  { %1142 = vmatmul.mubr.f32.gmra.mrb[36].mxu0 %v4403_v24  ;;  %v2789_v24 = vld [vmem:[%s5923_s0 + $0x7d8] sm:$0xff]  ;;  %1492 = vst.msk [vmem:[#allocation5] sm:$0xff] %vm836_vm1, %v4023_v62  ;;  %1493 = vst.msk [vmem:[#allocation5 + $0x8] sm:$0xff] %vm836_vm1, %v4023_v62 }
 0x15d   :  { %3821 = vmatpush3.bf16.msra.mxu0 %v3820_v31  ;;  %1146 = vmatprep.mubr.f32.mxu0 %v4435_v34  ;;  %v3828_v34 = vpack.c.bf16 %v2771_v46, %v2770_v45  ;;  %v3830_v52 = vpack.c.bf16 %v2789_v24, %v2788_v26  ;;  %1494 = vst.msk [vmem:[#allocation5 + $0x10] sm:$0xff] %vm836_vm1, %v4023_v62  ;;  %1495 = vst.msk [vmem:[#allocation5 + $0x18] sm:$0xff] %vm836_vm1, %v4023_v62  ;;  %v2172_v26 = vld [vmem:[%s5927_s6 + $0x8] sm:$0xff]  ;;  %v2171_v24 = vld [vmem:[%s5927_s6] sm:$0xff] }
 0x15e   :  { %3823 = vmatprep.subr.bf16.mxu0 %v3822_v21  ;;  %2198 = vperm.xlu1 %3889, %v2172_v26   ;;  %v2182_v62 = vld [vmem:[%s5927_s6 + $0x58] sm:$0xff]  ;;  %v2181_v26 = vld [vmem:[%s5927_s6 + $0x50] sm:$0xff] }
 0x15f   :  { %2193 = vperm.xlu0 %3888, %v2171_v24  }
 0x160   :  { %1147 = vmatmul.mubr.f32.gmra.mrb[38].mxu0 %v4451_v40  ;;  %v2791_v40 = vld [vmem:[%s5923_s0 + $0x7e8] sm:$0xff] }
 0x161   :  { %3825 = vmatpush3.bf16.msra.mxu0 %v3824_v18  ;;  %1301 = vmatprep.mubr.f32.mxu0 %v4480_v50  ;;  %v3832_v50 = vpack.c.bf16 %v2773_v55, %v2772_v16  ;;  %v3834_v58 = vpack.c.bf16 %v2791_v40, %v2790_v56  ;;  %v5247_v18 = vpop.permute.xlu1 %589  ;;  %v2174_v40 = vld [vmem:[%s5927_s6 + $0x18] sm:$0xff] }
 0x162   :  { %3827 = vmatprep.subr.bf16.mxu0 %v3826_v49  ;;  %v5249_v49 = vpop.permute.xlu0 %569  ;;  %2208 = vperm.xlu1 %3889, %v2174_v40  }
 0x165   :  { %3829 = vmatpush3.bf16.msra.mxu0 %v3828_v34  ;;  %v5251_v45 = vpop.permute.xlu1 %579 }
 0x166   :  { %3831 = vmatprep.subr.bf16.mxu0 %v3830_v52  ;;  %v5253_v46 = vpop.permute.xlu0 %574  ;;  %2218 = vperm.xlu1 %3889, %v2176_v29  }
 0x169   :  { %3833 = vmatpush3.bf16.msra.mxu0 %v3832_v50  ;;  %v5261_v52 = vpop.permute.xlu1 %599  ;;  %v2173_v50 = vld [vmem:[%s5927_s6 + $0x10] sm:$0xff] }
 0x16a   :  { %3835 = vmatprep.subr.bf16.mxu0 %v3834_v58  ;;  %v5264_v56 = vpop.permute.xlu0 %594  ;;  %2203 = vperm.xlu0 %3888, %v2173_v50  }
 0x16d   :  { %3837 = vmatpush3.bf16.msra.mxu0 %v3836_v1  ;;  %v2175_v1 = vld [vmem:[%s5927_s6 + $0x20] sm:$0xff]  ;;  %v5283_v3 = vpop.permute.xlu1 %609 }
 0x16e   :  { %3839 = vmatprep.subr.bf16.mxu0 %v3838_v32  ;;  %v5286_v4 = vpop.permute.xlu0 %604  ;;  %2213 = vperm.xlu0 %3888, %v2175_v1  }
 0x171   :  { %3841 = vmatpush3.bf16.msra.mxu0 %v3840_v41 }
 0x174   :  { %1302 = vmatmul.mubr.f32.vlgmr.msra.gmra.mrb[40].mxu0 %v4552_v28  ;;  %v3145_v28 = vpop.f32.mrb[18].mxu1 }
 0x175   :  { %1306 = vmatprep.mubr.f32.mxu0 %v4562_v30  ;;  %v3146_v7 = vpop.f32.mrb[19].mxu1 }
 0x176   :  { %v3148_v30 = vpop.f32.mrb[20].mxu1  ;;  %v5221_v43 = vadd.f32 %v3146_v7, %v3145_v28  ;;  %v2178_v28 = vld [vmem:[%s5927_s6 + $0x38] sm:$0xff]  ;;  %v2177_v7 = vld [vmem:[%s5927_s6 + $0x30] sm:$0xff] }
 0x177   :  { %2228 = vperm.xlu1 %3889, %v2178_v28   ;;  %2223 = vperm.xlu0 %3888, %v2177_v7  }
 0x178   :  { %1307 = vmatmul.mubr.f32.gmra.mrb[42].mxu0 %v4576_v33  ;;  %v3149_v33 = vpop.f32.mrb[21].mxu1 }
 0x179   :  { %1311 = vmatprep.mubr.f32.mxu0 %v4586_v37  ;;  %v5223_v37 = vadd.f32 %v3149_v33, %v3148_v30 }
 0x17c   :  { %1312 = vmatmul.mubr.f32.gmra.mrb[44].mxu0 %v4600_v39  ;;  %v3151_v39 = vpop.f32.mrb[22].mxu1 }
 0x17d   :  { %1316 = vmatprep.mubr.f32.mxu0 %v4610_v42  ;;  %v3152_v10 = vpop.f32.mrb[23].mxu1 }
 0x17e   :  { %v5225_v42 = vadd.f32 %v3152_v10, %v3151_v39  ;;  %v5299_v39 = vpop.permute.xlu1 %629 }
 0x180   :  { %1317 = vmatmul.mubr.f32.gmra.mrb[46].mxu0 %v4624_v44  ;;  %v3230_v44 = vpop.f32.mrb[24].mxu1 }
 0x181   :  { %3426 = vmatprep.mubr.msk.f32.mxu0 %vm642_vm0, %v4728_v57  ;;  %v3231_v2 = vpop.f32.mrb[25].mxu1 }
 0x182   :  { %v5227_v11 = vadd.f32 %v3231_v2, %v3230_v44  ;;  %v3233_v57 = vpop.f32.mrb[26].mxu1  ;;  %v5302_v2 = vpop.permute.xlu0 %624 }
 0x183   :  { %v3234_v38 = vpop.f32.mrb[27].mxu1 }
 0x184   :  { %v5229_v12 = vadd.f32 %v3234_v38, %v3233_v57  ;;  %v3236_v13 = vpop.f32.mrb[28].mxu1  ;;  %v2180_v57 = vld [vmem:[%s5927_s6 + $0x48] sm:$0xff]  ;;  %v2179_v38 = vld [vmem:[%s5927_s6 + $0x40] sm:$0xff] }
 0x185   :  { %v3237_v19 = vpop.f32.mrb[29].mxu1  ;;  %2238 = vperm.xlu1 %3889, %v2180_v57   ;;  %2233 = vperm.xlu0 %3888, %v2179_v38  }
 0x186   :  { %v5231_v17 = vadd.f32 %v3237_v19, %v3236_v13  ;;  %v3239_v31 = vpop.f32.mrb[30].mxu1 }
 0x187   :  { %v3240_v21 = vpop.f32.mrb[31].mxu1 }
 0x188   :  { %v5233_v22 = vadd.f32 %v3240_v21, %v3239_v31 }
 0x189   :  { %2248 = vperm.xlu1 %3889, %v2182_v62   ;;  %2243 = vperm.xlu0 %3888, %v2181_v26  }
 0x207   :  { %v3396_v34 = vpop.f32.mrb[16].mxu0 }
 0x208   :  { %v763_v16 = vadd.f32 %v3396_v34, %v5249_v49  ;;  %v757_v55 = vpop.f32.mrb[17].mxu0  ;;  %v5321_v34 = vpop.permute.xlu1 %619 }
 0x209   :  { %v758_v58 = vadd.f32 %v757_v55, %v5245_v25 }
 0x20a   :  { %838 = vst.msk [vmem:[#allocation2 + $0x8] sm:$0xff] %vm836_vm1, %v763_v16  ;;  %v5324_v16 = vpop.permute.xlu0 %614 }
 0x20b   :  { %837 = vst.msk [vmem:[#allocation2] sm:$0xff] %vm836_vm1, %v758_v58  ;;  %v3399_v60 = vpop.f32.mrb[18].mxu0  ;;  %v2184_v58 = vld [vmem:[%s5927_s6 + $0x68] sm:$0xff] }
 0x20c   :  { %v773_v63 = vadd.f32 %v3399_v60, %v5251_v45  ;;  %v767_v27 = vpop.f32.mrb[19].mxu0  ;;  %v2183_v60 = vld [vmem:[%s5927_s6 + $0x60] sm:$0xff]  ;;  %2258 = vperm.xlu1 %3889, %v2184_v58  }
 0x20d   :  { %v768_v32 = vadd.f32 %v767_v27, %v5253_v46  ;;  %2253 = vperm.xlu0 %3888, %v2183_v60  }
 0x20e   :  { %840 = vst.msk [vmem:[#allocation2 + $0x18] sm:$0xff] %vm836_vm1, %v773_v63  ;;  %v5348_v28 = vpop.permute.xlu0 %634 }
 0x20f   :  { %839 = vst.msk [vmem:[#allocation2 + $0x10] sm:$0xff] %vm836_vm1, %v768_v32  ;;  %v3402_v41 = vpop.f32.mrb[20].mxu0  ;;  %v2186_v32 = vld [vmem:[%s5927_s6 + $0x78] sm:$0xff] }
 0x210   :  { %v783_v6 = vadd.f32 %v3402_v41, %v5247_v18  ;;  %v777_v0 = vpop.f32.mrb[21].mxu0  ;;  %v2185_v41 = vld [vmem:[%s5927_s6 + $0x70] sm:$0xff]  ;;  %2268 = vperm.xlu1 %3889, %v2186_v32  }
 0x211   :  { %v778_v30 = vadd.f32 %v777_v0, %v5243_v20  ;;  %v5345_v0 = vpop.permute.xlu1 %639  ;;  %2263 = vperm.xlu0 %3888, %v2185_v41  }
 0x212   :  { %842 = vst.msk [vmem:[#allocation2 + $0x28] sm:$0xff] %vm836_vm1, %v783_v6 }
 0x213   :  { %841 = vst.msk [vmem:[#allocation2 + $0x20] sm:$0xff] %vm836_vm1, %v778_v30  ;;  %v3405_v33 = vpop.f32.mrb[22].mxu0 }
 0x214   :  { %v793_v10 = vadd.f32 %v3405_v33, %v5261_v52  ;;  %v787_v44 = vpop.f32.mrb[23].mxu0 }
 0x215   :  { %v788_v13 = vadd.f32 %v787_v44, %v5264_v56 }
 0x216   :  { %844 = vst.msk [vmem:[#allocation2 + $0x38] sm:$0xff] %vm836_vm1, %v793_v10 }
 0x217   :  { %843 = vst.msk [vmem:[#allocation2 + $0x30] sm:$0xff] %vm836_vm1, %v788_v13  ;;  %v3408_v19 = vpop.f32.mrb[24].mxu0 }
 0x218   :  { %v803_v31 = vadd.f32 %v3408_v19, %v5283_v3  ;;  %v797_v21 = vpop.f32.mrb[25].mxu0 }
 0x219   :  { %v798_v24 = vadd.f32 %v797_v21, %v5286_v4 }
 0x21a   :  { %846 = vst.msk [vmem:[#allocation2 + $0x48] sm:$0xff] %vm836_vm1, %v803_v31 }
 0x21b   :  { %845 = vst.msk [vmem:[#allocation2 + $0x40] sm:$0xff] %vm836_vm1, %v798_v24  ;;  %v3411_v55 = vpop.f32.mrb[26].mxu0 }
 0x21c   :  { %v813_v40 = vadd.f32 %v3411_v55, %v5321_v34  ;;  %v807_v50 = vpop.f32.mrb[27].mxu0 }
 0x21d   :  { %v808_v63 = vadd.f32 %v807_v50, %v5324_v16 }
 0x21e   :  { %848 = vst.msk [vmem:[#allocation2 + $0x58] sm:$0xff] %vm836_vm1, %v813_v40 }
 0x21f   :  { %847 = vst.msk [vmem:[#allocation2 + $0x50] sm:$0xff] %vm836_vm1, %v808_v63  ;;  %v3414_v27 = vpop.f32.mrb[28].mxu0 }
 0x220   :  { %v823_v29 = vadd.f32 %v3414_v27, %v5299_v39  ;;  %v817_v1 = vpop.f32.mrb[29].mxu0 }
 0x221   :  { %v818_v6 = vadd.f32 %v817_v1, %v5302_v2 }
 0x222   :  { %850 = vst.msk [vmem:[#allocation2 + $0x68] sm:$0xff] %vm836_vm1, %v823_v29 }
 0x223   :  { %849 = vst.msk [vmem:[#allocation2 + $0x60] sm:$0xff] %vm836_vm1, %v818_v6  ;;  %v3417_v7 = vpop.f32.mrb[30].mxu0 }
 0x224   :  { %v833_v30 = vadd.f32 %v3417_v7, %v5345_v0  ;;  %v827_v33 = vpop.f32.mrb[31].mxu0 }
 0x225   :  { %v828_v10 = vadd.f32 %v827_v33, %v5348_v28 }
 0x226   :  { %852 = vst.msk [vmem:[#allocation2 + $0x78] sm:$0xff] %vm836_vm1, %v833_v30 }
 0x227   :  { %851 = vst.msk [vmem:[#allocation2 + $0x70] sm:$0xff] %vm836_vm1, %v828_v10  ;;  %v3186_v44 = vpop.f32.mrb[32].mxu0 }
 0x228   :  { %v3187_v57 = vpop.f32.mrb[33].mxu0 }
 0x229   :  { %v3188_v38 = vadd.f32 %v3187_v57, %v3186_v44 }
 0x22b   :  { %v1134_v13 = vadd.f32 %v3188_v38, %v5219_v48  ;;  %v3189_v19 = vpop.f32.mrb[34].mxu0 }
 0x22c   :  { %v3190_v31 = vpop.f32.mrb[35].mxu0 }
 0x22d   :  { %v1219_v21 = vadd.f32 %v5227_v11, %v1134_v13  ;;  %v3191_v62 = vadd.f32 %v3190_v31, %v3189_v19  ;;  %v1512_v31 = vld [vmem:[#allocation4] sm:$0xff] }
 0x22f   :  { %v1139_v26 = vadd.f32 %v3191_v62, %v5221_v43  ;;  %v3192_v24 = vpop.f32.mrb[36].mxu0 }
 0x230   :  { %v3193_v55 = vpop.f32.mrb[37].mxu0 }
 0x231   :  { %v1224_v40 = vadd.f32 %v5229_v12, %v1139_v26  ;;  %v3194_v50 = vadd.f32 %v3193_v55, %v3192_v24 }
 0x233   :  { %v1144_v58 = vadd.f32 %v3194_v50, %v5223_v37  ;;  %v3195_v60 = vpop.f32.mrb[38].mxu0  ;;  %v1515_v50 = vld [vmem:[#allocation4 + $0x18] sm:$0xff] }
 0x234   :  { %v3196_v63 = vpop.f32.mrb[39].mxu0 }
 0x235   :  { %v1229_v27 = vadd.f32 %v5231_v17, %v1144_v58  ;;  %v3197_v29 = vadd.f32 %v3196_v63, %v3195_v60  ;;  %v1496_v60 = vld [vmem:[%s5928_s3] sm:$0xff]  ;;  %v5497_v63 = vld [vmem:[%s5928_s3 + $0x78] sm:$0xff] }
 0x237   :  { %v1149_v48 = vadd.f32 %v3197_v29, %v5225_v42 }
 0x239   :  { %v1234_v1 = vadd.f32 %v5233_v22, %v1149_v48 }
 0x247   :  { %v3274_v11 = vpop.f32.mrb[40].mxu0 }
 0x248   :  { %v3275_v32 = vpop.f32.mrb[41].mxu0 }
 0x249   :  { %v3276_v41 = vadd.f32 %v3275_v32, %v3274_v11 }
 0x24b   :  { %v1304_v43 = vadd.f32 %v3276_v41, %v1219_v21  ;;  %v3277_v6 = vpop.f32.mrb[42].mxu0  ;;  %v1513_v21 = vld [vmem:[#allocation4 + $0x8] sm:$0xff] }
 0x24c   :  { %v3278_v7 = vpop.f32.mrb[43].mxu0  ;;  %v3850_v55 = vpack.c.bf16 %v1513_v21, %v1512_v31 }
 0x24d   :  { %v3279_v30 = vadd.f32 %v3278_v7, %v3277_v6  ;;  %v1322_v37 = vmax.f32 %v1304_v43, 0.0 }
 0x24f   :  { %v1309_v12 = vadd.f32 %v3279_v30, %v1224_v40  ;;  %v3280_v33 = vpop.f32.mrb[44].mxu0  ;;  %v1514_v40 = vld [vmem:[#allocation4 + $0x10] sm:$0xff] }
 0x250   :  { %v3281_v10 = vpop.f32.mrb[45].mxu0  ;;  %v3854_v58 = vpack.c.bf16 %v1515_v50, %v1514_v40 }
 0x251   :  { %v1323_v44 = vmax.f32 %v1309_v12, 0.0  ;;  %v3282_v57 = vadd.f32 %v3281_v10, %v3280_v33 }
 0x253   :  { %v3842_v38 = vpack.c.bf16 %v1323_v44, %v1322_v37  ;;  %v1314_v17 = vadd.f32 %v3282_v57, %v1229_v27  ;;  %v3283_v13 = vpop.f32.mrb[46].mxu0  ;;  %v5504_v27 = vld [vmem:[%s5929_s5] sm:$0xff]  ;;  %v1517_v37 = vld [vmem:[#allocation2 + $0x8] sm:$0xff] }
 0x254   :  { %v3284_v19 = vpop.f32.mrb[47].mxu0 }
 0x255   :  { %v3285_v42 = vadd.f32 %v3284_v19, %v3283_v13  ;;  %3843 = vmatprep.subr.bf16.mxu0 %v3842_v38  ;;  %3882 = vmatprep.subr.bf16.mxu1 %v3842_v38  ;;  %v1324_v62 = vmax.f32 %v1314_v17, 0.0 }
 0x256   :  { %3845 = vmatpush3.bf16.msra.mxu0 %v3842_v38  ;;  %3884 = vmatpush3.bf16.msra.mxu1 %v3842_v38  ;;  %v1516_v38 = vld [vmem:[#allocation2] sm:$0xff] }
 0x257   :  { %v1319_v22 = vadd.f32 %v3285_v42, %v1234_v1 }
 0x259   :  { %v1325_v26 = vmax.f32 %v1319_v22, 0.0  ;;  %v1519_v22 = vld [vmem:[#allocation2 + $0x18] sm:$0xff] }
 0x25b   :  { %v3846_v24 = vpack.c.bf16 %v1325_v26, %v1324_v62 }
 0x25d   :  { %3847 = vmatprep.subr.bf16.mxu0 %v3846_v24  ;;  %3883 = vmatprep.subr.bf16.mxu1 %v3846_v24 }
 0x25e   :  { %3849 = vmatpush3.bf16.msra.mxu0 %v3846_v24  ;;  %3885 = vmatpush3.bf16.msra.mxu1 %v3846_v24 }
 0x25f   :  { %3851 = vmatprep.subr.bf16.mxu0 %v3850_v55 }
 0x261   :  { %3427 = vmatmul.mubr.msk.f32.vlgmr.msra.gmra.mrb[48].mxu0 %vm642_vm0, %v4922_v53  ;;  %3433 = vmatmul.mubr.msk.f32.vlgmr.msra.gmra.mrb[32].mxu1 %vm642_vm0, %v4969_v36  ;;  %v5383_v53 = vld [vmem:[%s5928_s3 + $0x8] sm:$0xff]  ;;  %v5407_v36 = vld [vmem:[%s5928_s3 + $0x20] sm:$0xff] }
 0x262   :  { %3853 = vmatpush3.bf16.msra.mxu0 %v3850_v55  ;;  %3429 = vmatprep.mubr.msk.f32.mxu0 %vm642_vm0, %v4927_v54  ;;  %v5389_v54 = vld [vmem:[%s5928_s3 + $0x10] sm:$0xff] }
 0x263   :  { %3435 = vmatprep.mubr.msk.f32.mxu1 %vm642_vm0, %v4974_v5  ;;  %3855 = vmatprep.subr.bf16.mxu0 %v3854_v58  ;;  %v5420_v5 = vld [vmem:[%s5928_s3 + $0x28] sm:$0xff]  ;;  %v1518_v55 = vld [vmem:[#allocation2 + $0x10] sm:$0xff] }
 0x265   :  { %3430 = vmatmul.mubr.msk.f32.gmra.mrb[50].mxu0 %vm642_vm0, %v4948_v61  ;;  %3436 = vmatmul.mubr.msk.f32.gmra.mrb[34].mxu1 %vm642_vm0, %v4995_v8  ;;  %v5402_v61 = vld [vmem:[%s5928_s3 + $0x18] sm:$0xff]  ;;  %v5425_v8 = vld [vmem:[%s5928_s3 + $0x30] sm:$0xff] }
 0x266   :  { %3857 = vmatpush3.bf16.msra.mxu0 %v3854_v58  ;;  %3438 = vmatprep.mubr.msk.f32.mxu1 %vm642_vm0, %v5000_v9  ;;  %v5438_v9 = vld [vmem:[%s5928_s3 + $0x38] sm:$0xff]  ;;  %v1521_v58 = vld [vmem:[#allocation2 + $0x28] sm:$0xff] }
 0x267   :  { %3458 = vmatprep.mubr.msk.f32.mxu0 %vm642_vm0, %v1496_v60 }
 0x269   :  { %3439 = vmatmul.mubr.msk.f32.gmra.mrb[36].mxu1 %vm642_vm0, %v5021_v14  ;;  %3459 = vmatmul.mubr.msk.f32.vlgmr.msra.gmra.mrb[52].mxu0 %vm642_vm0, %v5383_v53  ;;  %v5443_v14 = vld [vmem:[%s5928_s3 + $0x40] sm:$0xff] }
 0x26a   :  { %3441 = vmatprep.mubr.msk.f32.mxu1 %vm642_vm0, %v5026_v15  ;;  %3461 = vmatprep.mubr.msk.f32.mxu0 %vm642_vm0, %v5389_v54  ;;  %v5454_v15 = vld [vmem:[%s5928_s3 + $0x48] sm:$0xff] }
 0x26d   :  { %3442 = vmatmul.mubr.msk.f32.gmra.mrb[38].mxu1 %vm642_vm0, %v5047_v35  ;;  %3462 = vmatmul.mubr.msk.f32.gmra.mrb[54].mxu0 %vm642_vm0, %v5402_v61  ;;  %v5460_v35 = vld [vmem:[%s5928_s3 + $0x50] sm:$0xff] }
 0x26e   :  { %3444 = vmatprep.mubr.msk.f32.mxu1 %vm642_vm0, %v5052_v23  ;;  %3464 = vmatprep.mubr.msk.f32.mxu0 %vm642_vm0, %v5407_v36  ;;  %v5469_v23 = vld [vmem:[%s5928_s3 + $0x58] sm:$0xff] }
 0x271   :  { %3445 = vmatmul.mubr.msk.f32.gmra.mrb[40].mxu1 %vm642_vm0, %v5073_v47  ;;  %3465 = vmatmul.mubr.msk.f32.gmra.mrb[56].mxu0 %vm642_vm0, %v5420_v5  ;;  %v5474_v47 = vld [vmem:[%s5928_s3 + $0x60] sm:$0xff] }
 0x272   :  { %3447 = vmatprep.mubr.msk.f32.mxu1 %vm642_vm0, %v5078_v51  ;;  %3467 = vmatprep.mubr.msk.f32.mxu0 %vm642_vm0, %v5425_v8  ;;  %v5483_v51 = vld [vmem:[%s5928_s3 + $0x68] sm:$0xff] }
 0x275   :  { %3448 = vmatmul.mubr.msk.f32.gmra.mrb[42].mxu1 %vm642_vm0, %v5099_v59  ;;  %3468 = vmatmul.mubr.msk.f32.gmra.mrb[58].mxu0 %vm642_vm0, %v5438_v9  ;;  %v5488_v59 = vld [vmem:[%s5928_s3 + $0x70] sm:$0xff] }
 0x276   :  { %3470 = vmatprep.mubr.msk.f32.mxu0 %vm642_vm0, %v5443_v14  ;;  %3490 = vmatprep.mubr.msk.f32.mxu1 %vm642_vm0, %v1496_v60 }
 0x279   :  { %3471 = vmatmul.mubr.msk.f32.gmra.mrb[60].mxu0 %vm642_vm0, %v5454_v15 }
 0x27a   :  { %3473 = vmatprep.mubr.msk.f32.mxu0 %vm642_vm0, %v5460_v35 }
 0x27d   :  { %3474 = vmatmul.mubr.msk.f32.gmra.mrb[62].mxu0 %vm642_vm0, %v5469_v23 }
 0x27e   :  { %3476 = vmatprep.mubr.msk.f32.mxu0 %vm642_vm0, %v5474_v47 }
 0x281   :  { %3477 = vmatmul.mubr.msk.f32.gmra.mrb[64].mxu0 %vm642_vm0, %v5483_v51 }
 0x282   :  { %3479 = vmatprep.mubr.msk.f32.mxu0 %vm642_vm0, %v5488_v59 }
 0x285   :  { %3480 = vmatmul.mubr.msk.f32.gmra.mrb[66].mxu0 %vm642_vm0, %v5497_v63 }
 0x286   :  { %3522 = vmatprep.mubr.msk.f32.mxu0 %vm642_vm0, %v5504_v27 }
 0x334   :  { %v3428_v29 = vpop.f32.mrb[48].mxu0  ;;  %v3434_v48 = vpop.f32.mrb[32].mxu1 }
 0x335   :  { %v1398_v1 = vadd.f32 %v3428_v29, %v5249_v49  ;;  %v1418_v11 = vadd.f32 %v3434_v48, %v5247_v18  ;;  %v1392_v32 = vpop.f32.mrb[49].mxu0  ;;  %v1412_v41 = vpop.f32.mrb[33].mxu1 }
 0x336   :  { %v1393_v43 = vadd.f32 %v1392_v32, %v5245_v25  ;;  %v1413_v6 = vadd.f32 %v1412_v41, %v5243_v20 }
 0x337   :  { %1473 = vst.msk [vmem:[#allocation2 + $0x88] sm:$0xff] %vm836_vm1, %v1398_v1  ;;  %1477 = vst.msk [vmem:[#allocation2 + $0xa8] sm:$0xff] %vm836_vm1, %v1418_v11  ;;  %v1520_v1 = vld [vmem:[#allocation2 + $0x20] sm:$0xff] }
 0x338   :  { %1472 = vst.msk [vmem:[#allocation2 + $0x80] sm:$0xff] %vm836_vm1, %v1393_v43  ;;  %1476 = vst.msk [vmem:[#allocation2 + $0xa0] sm:$0xff] %vm836_vm1, %v1413_v6  ;;  %v3431_v7 = vpop.f32.mrb[50].mxu0  ;;  %v3437_v30 = vpop.f32.mrb[34].mxu1  ;;  %v1523_v43 = vld [vmem:[#allocation2 + $0x38] sm:$0xff] }
 0x339   :  { %v1408_v49 = vadd.f32 %v3431_v7, %v5251_v45  ;;  %v1428_v18 = vadd.f32 %v3437_v30, %v5261_v52  ;;  %v1402_v12 = vpop.f32.mrb[51].mxu0  ;;  %v1422_v33 = vpop.f32.mrb[35].mxu1 }
 0x33a   :  { %v1403_v25 = vadd.f32 %v1402_v12, %v5253_v46  ;;  %v1423_v20 = vadd.f32 %v1422_v33, %v5264_v56  ;;  %v1522_v33 = vld [vmem:[#allocation2 + $0x30] sm:$0xff] }
 0x33b   :  { %1475 = vst.msk [vmem:[#allocation2 + $0x98] sm:$0xff] %vm836_vm1, %v1408_v49  ;;  %1479 = vst.msk [vmem:[#allocation2 + $0xb8] sm:$0xff] %vm836_vm1, %v1428_v18 }
 0x33c   :  { %1474 = vst.msk [vmem:[#allocation2 + $0x90] sm:$0xff] %vm836_vm1, %v1403_v25  ;;  %1478 = vst.msk [vmem:[#allocation2 + $0xb0] sm:$0xff] %vm836_vm1, %v1423_v20  ;;  %v3440_v10 = vpop.f32.mrb[36].mxu1  ;;  %v3460_v44 = vpop.f32.mrb[52].mxu0 }
 0x33d   :  { %v1438_v45 = vadd.f32 %v3440_v10, %v5283_v3  ;;  %v1726_v52 = vadd.f32 %v3460_v44, %v1517_v37  ;;  %v1432_v57 = vpop.f32.mrb[37].mxu1  ;;  %v1646_v17 = vpop.f32.mrb[53].mxu0 }
 0x33e   :  { %v1433_v46 = vadd.f32 %v1432_v57, %v5286_v4  ;;  %v1725_v56 = vadd.f32 %v1646_v17, %v1516_v38  ;;  %v1525_v57 = vld [vmem:[#allocation2 + $0x48] sm:$0xff] }
 0x33f   :  { %1481 = vst.msk [vmem:[#allocation2 + $0xc8] sm:$0xff] %vm836_vm1, %v1438_v45  ;;  %v2827_v13 = vmul.f32 -1.442695, %v1726_v52 }
 0x340   :  { %1480 = vst.msk [vmem:[#allocation2 + $0xc0] sm:$0xff] %vm836_vm1, %v1433_v46  ;;  %v2826_v19 = vmul.f32 -1.442695, %v1725_v56  ;;  %v3443_v42 = vpop.f32.mrb[38].mxu1  ;;  %v3463_v31 = vpop.f32.mrb[54].mxu0  ;;  %v1524_v46 = vld [vmem:[#allocation2 + $0x40] sm:$0xff] }
 0x341   :  { %3890 = vpow2.f32 %v2827_v13  ;;  %v1448_v21 = vadd.f32 %v3443_v42, %v5321_v34  ;;  %v1728_v3 = vadd.f32 %v3463_v31, %v1519_v22  ;;  %v1442_v62 = vpop.f32.mrb[39].mxu1  ;;  %v1656_v26 = vpop.f32.mrb[55].mxu0  ;;  %v1527_v31 = vld [vmem:[#allocation2 + $0x58] sm:$0xff] }
 0x342   :  { %3892 = vpow2.f32 %v2826_v19  ;;  %v1443_v24 = vadd.f32 %v1442_v62, %v5324_v16  ;;  %v1727_v40 = vadd.f32 %v1656_v26, %v1518_v55  ;;  %v1526_v62 = vld [vmem:[#allocation2 + $0x50] sm:$0xff] }
 0x343   :  { %1483 = vst.msk [vmem:[#allocation2 + $0xd8] sm:$0xff] %vm836_vm1, %v1448_v21  ;;  %v2829_v4 = vmul.f32 -1.442695, %v1728_v3 }
 0x344   :  { %1482 = vst.msk [vmem:[#allocation2 + $0xd0] sm:$0xff] %vm836_vm1, %v1443_v24  ;;  %v3446_v50 = vpop.f32.mrb[40].mxu1  ;;  %v3466_v60 = vpop.f32.mrb[56].mxu0  ;;  %v2828_v6 = vmul.f32 -1.442695, %v1727_v40 }
 0x345   :  { %3894 = vpow2.f32 %v2829_v4  ;;  %v1458_v29 = vadd.f32 %v3446_v50, %v5299_v39  ;;  %v1730_v34 = vadd.f32 %v3466_v60, %v1521_v58  ;;  %v1452_v48 = vpop.f32.mrb[41].mxu1  ;;  %v1666_v11 = vpop.f32.mrb[57].mxu0  ;;  %v1529_v60 = vld [vmem:[#allocation2 + $0x68] sm:$0xff] }
 0x346   :  { %v1453_v32 = vadd.f32 %v1452_v48, %v5302_v2  ;;  %v1729_v16 = vadd.f32 %v1666_v11, %v1520_v1 }
 0x347   :  { %1485 = vst.msk [vmem:[#allocation2 + $0xe8] sm:$0xff] %vm836_vm1, %v1458_v29  ;;  %v2831_v41 = vmul.f32 -1.442695, %v1730_v34 }
 0x348   :  { %1484 = vst.msk [vmem:[#allocation2 + $0xe0] sm:$0xff] %vm836_vm1, %v1453_v32  ;;  %v2830_v7 = vmul.f32 -1.442695, %v1729_v16  ;;  %v3449_v30 = vpop.f32.mrb[42].mxu1  ;;  %v3469_v49 = vpop.f32.mrb[58].mxu0  ;;  %v1528_v32 = vld [vmem:[#allocation2 + $0x60] sm:$0xff] }
 0x349   :  { %3896 = vpow2.f32 %v2831_v41  ;;  %v1468_v39 = vadd.f32 %v3449_v30, %v5345_v0  ;;  %v1732_v18 = vadd.f32 %v3469_v49, %v1523_v43  ;;  %v1462_v12 = vpop.f32.mrb[43].mxu1  ;;  %v1676_v25 = vpop.f32.mrb[59].mxu0 }
 0x34a   :  { %3898 = vpow2.f32 %v2830_v7  ;;  %v1463_v2 = vadd.f32 %v1462_v12, %v5348_v28  ;;  %v1731_v20 = vadd.f32 %v1676_v25, %v1522_v33  ;;  %v1530_v33 = vld [vmem:[#allocation2 + $0x70] sm:$0xff] }
 0x34b   :  { %v3891_v10 = vpop.eup %3890  ;;  %1487 = vst.msk [vmem:[#allocation2 + $0xf8] sm:$0xff] %vm836_vm1, %v1468_v39  ;;  %v2833_v37 = vmul.f32 -1.442695, %v1732_v18  ;;  %3900 = vpow2.f32 %v2828_v6  ;;  %v1531_v6 = vld [vmem:[#allocation2 + $0x78] sm:$0xff] }
 0x34c   :  { %v3893_v44 = vpop.eup %3892  ;;  %v1778_v45 = vadd.f32 1.0, %v3891_v10  ;;  %1486 = vst.msk [vmem:[#allocation2 + $0xf0] sm:$0xff] %vm836_vm1, %v1463_v2  ;;  %v2832_v52 = vmul.f32 -1.442695, %v1731_v20  ;;  %v3472_v0 = vpop.f32.mrb[60].mxu0 }
 0x34d   :  { %v1777_v38 = vadd.f32 1.0, %v3893_v44  ;;  %3902 = vpow2.f32 %v2833_v37  ;;  %v1734_v17 = vadd.f32 %v3472_v0, %v1525_v57  ;;  %v1686_v56 = vpop.f32.mrb[61].mxu0 }
 0x34e   :  { %v1733_v13 = vadd.f32 %v1686_v56, %v1524_v46  ;;  %3904 = vrcp.f32 %v1778_v45  ;;  %v1820_v56 = vld [vmem:[#allocation5 + $0x18] sm:$0xff] }
 0x34f   :  { %v3895_v28 = vpop.eup %3894  ;;  %v2835_v19 = vmul.f32 -1.442695, %v1734_v17  ;;  %3906 = vpow2.f32 %v2832_v52  ;;  %v1818_v52 = vld [vmem:[#allocation5 + $0x8] sm:$0xff] }
 0x350   :  { %v1780_v42 = vadd.f32 1.0, %v3895_v28  ;;  %v2834_v22 = vmul.f32 -1.442695, %v1733_v13  ;;  %v3475_v21 = vpop.f32.mrb[62].mxu0  ;;  %3908 = vrcp.f32 %v1777_v38  ;;  %v1817_v38 = vld [vmem:[#allocation5] sm:$0xff] }
 0x351   :  { %v1736_v3 = vadd.f32 %v3475_v21, %v1527_v31  ;;  %v1696_v26 = vpop.f32.mrb[63].mxu0  ;;  %3910 = vpow2.f32 %v2835_v19 }
 0x352   :  { %v1735_v24 = vadd.f32 %v1696_v26, %v1526_v62  ;;  %3912 = vrcp.f32 %v1780_v42  ;;  %v1819_v62 = vld [vmem:[#allocation5 + $0x10] sm:$0xff] }
 0x353   :  { %v3897_v4 = vpop.eup %3896  ;;  %v2837_v55 = vmul.f32 -1.442695, %v1736_v3  ;;  %3914 = vpow2.f32 %v2834_v22 }
 0x354   :  { %v3899_v40 = vpop.eup %3898  ;;  %v1782_v50 = vadd.f32 1.0, %v3897_v4  ;;  %v2836_v58 = vmul.f32 -1.442695, %v1735_v24  ;;  %v3478_v29 = vpop.f32.mrb[64].mxu0 }
 0x355   :  { %v1781_v34 = vadd.f32 1.0, %v3899_v40  ;;  %3916 = vpow2.f32 %v2837_v55  ;;  %v1738_v48 = vadd.f32 %v3478_v29, %v1529_v60  ;;  %v1706_v1 = vpop.f32.mrb[65].mxu0  ;;  %v3901_v11 = vpop.eup %3900 }
 0x356   :  { %3918 = vrcp.f32 %v1782_v50  ;;  %v1737_v41 = vadd.f32 %v1706_v1, %v1528_v32  ;;  %v1779_v12 = vadd.f32 1.0, %v3901_v11 }
 0x357   :  { %v3903_v16 = vpop.eup %3902  ;;  %3920 = vrcp.f32 %v1781_v34 }
 0x358   :  { %v1784_v43 = vadd.f32 1.0, %v3903_v16  ;;  %3922 = vpow2.f32 %v2836_v58  ;;  %v3481_v7 = vpop.f32.mrb[66].mxu0  ;;  %v3905_v30 = vpop.eup %3904 }
 0x359   :  { %3924 = vtanh.f32 %v1738_v48  ;;  %v1740_v49 = vadd.f32 %v3481_v7, %v1531_v6  ;;  %v1716_v39 = vpop.f32.mrb[67].mxu0  ;;  %v3907_v18 = vpop.eup %3906 }
 0x35a   :  { %3926 = vrcp.f32 %v1784_v43  ;;  %v3909_v25 = vpop.eup %3908  ;;  %v1783_v2 = vadd.f32 1.0, %v3907_v18  ;;  %v1739_v20 = vadd.f32 %v1716_v39, %v1530_v33 }
 0x35b   :  { %3928 = vtanh.f32 %v1737_v41  ;;  %v3911_v10 = vpop.eup %3910 }
 0x35c   :  { %3930 = vtanh.f32 %v1740_v49  ;;  %v3913_v37 = vpop.eup %3912  ;;  %v1786_v13 = vadd.f32 1.0, %v3911_v10 }
 0x35d   :  { %3932 = vrcp.f32 %v1783_v2  ;;  %v3915_v44 = vpop.eup %3914 }
 0x35e   :  { %3934 = vrcp.f32 %v1779_v12  ;;  %v1785_v19 = vadd.f32 1.0, %v3915_v44 }
 0x35f   :  { %v3917_v45 = vpop.eup %3916  ;;  %3936 = vtanh.f32 %v1739_v20 }
 0x360   :  { %v3919_v57 = vpop.eup %3918  ;;  %v1788_v26 = vadd.f32 1.0, %v3917_v45  ;;  %3938 = vrcp.f32 %v1786_v13 }
 0x361   :  { %v3921_v0 = vpop.eup %3920  ;;  %v1822_v46 = vmul.f32 %v3919_v57, %v1818_v52  ;;  %3940 = vrcp.f32 %v1785_v19 }
 0x362   :  { %v3923_v17 = vpop.eup %3922  ;;  %v1821_v22 = vmul.f32 %v3921_v0, %v1817_v38 }
 0x363   :  { %v3925_v28 = vpop.eup %3924  ;;  %v1787_v48 = vadd.f32 1.0, %v3923_v17 }
 0x364   :  { %v3927_v42 = vpop.eup %3926  ;;  %v1826_v31 = vmul.f32 %v3925_v28, %v3905_v30 }
 0x365   :  { %v3929_v21 = vpop.eup %3928  ;;  %v1824_v3 = vmul.f32 %v3927_v42, %v1820_v56  ;;  %v5555_v42 = vld [vmem:[%s5929_s5 + $0x8] sm:$0xff] }
 0x366   :  { %v3931_v24 = vpop.eup %3930  ;;  %v1830_v4 = vadd.f32 %v1826_v31, %v1822_v46  ;;  %v1825_v55 = vmul.f32 %v3929_v21, %v3909_v25  ;;  %v5573_v31 = vld [vmem:[%s5929_s5 + $0x18] sm:$0xff] }
 0x367   :  { %v3933_v40 = vpop.eup %3932  ;;  %v1828_v50 = vmul.f32 %v3931_v24, %v3913_v37 }
 0x368   :  { %v3935_v58 = vpop.eup %3934  ;;  %v1823_v60 = vmul.f32 %v3933_v40, %v1819_v62  ;;  %3942 = vtanh.f32 %v1830_v4  ;;  %1842 = vst.msk [vmem:[#allocation5 + $0x8] sm:$0xff] %vm836_vm1, %v1830_v4  ;;  %v1829_v29 = vadd.f32 %v1825_v55, %v1821_v22  ;;  %v5562_v22 = vld [vmem:[%s5929_s5 + $0x10] sm:$0xff]  ;;  %v1861_v55 = vld [vmem:[#allocation2 + $0x80] sm:$0xff] }
 0x369   :  { %v3937_v34 = vpop.eup %3936  ;;  %3944 = vrcp.f32 %v1788_v26  ;;  %v1832_v1 = vadd.f32 %v1828_v50, %v1824_v3  ;;  %v1862_v26 = vld [vmem:[#allocation2 + $0x88] sm:$0xff] }
 0x36a   :  { %3946 = vtanh.f32 %v1829_v29  ;;  %1841 = vst.msk [vmem:[#allocation5] sm:$0xff] %vm836_vm1, %v1829_v29  ;;  %v1827_v11 = vmul.f32 %v3937_v34, %v3935_v58  ;;  %v3939_v16 = vpop.eup %3938 }
 0x36b   :  { %3948 = vtanh.f32 %v1832_v1  ;;  %1844 = vst.msk [vmem:[#allocation5 + $0x18] sm:$0xff] %vm836_vm1, %v1832_v1  ;;  %v3941_v41 = vpop.eup %3940  ;;  %v1864_v1 = vld [vmem:[#allocation2 + $0x98] sm:$0xff] }
 0x36c   :  { %v1831_v32 = vadd.f32 %v1827_v11, %v1823_v60  ;;  %3950 = vrcp.f32 %v1787_v48 }
 0x36e   :  { %3952 = vtanh.f32 %v1831_v32  ;;  %1843 = vst.msk [vmem:[#allocation5 + $0x10] sm:$0xff] %vm836_vm1, %v1831_v32 }
 0x372   :  { %v3943_v43 = vpop.eup %3942 }
 0x373   :  { %v3945_v6 = vpop.eup %3944  ;;  %v1838_v7 = vmul.f32 %v3943_v43, %v3939_v16 }
 0x374   :  { %v3947_v30 = vpop.eup %3946 }
 0x375   :  { %v3949_v49 = vpop.eup %3948  ;;  %1846 = vst.msk [vmem:[#allocation4 + $0x8] sm:$0xff] %vm836_vm1, %v1838_v7  ;;  %v1850_v39 = vmax.f32 %v1838_v7, 0.0  ;;  %v1837_v18 = vmul.f32 %v3947_v30, %v3941_v41  ;;  %v1863_v30 = vld [vmem:[#allocation2 + $0x90] sm:$0xff] }
 0x376   :  { %v1840_v12 = vmul.f32 %v3949_v49, %v3945_v6  ;;  %v3951_v33 = vpop.eup %3950 }
 0x377   :  { %1854 = vst.msk [vmem:[#allocation3 + $0x8] sm:$0xff] %vm836_vm1, %v1850_v39  ;;  %1845 = vst.msk [vmem:[#allocation4] sm:$0xff] %vm836_vm1, %v1837_v18  ;;  %v1849_v25 = vmax.f32 %v1837_v18, 0.0 }
 0x378   :  { %v3953_v2 = vpop.eup %3952  ;;  %1848 = vst.msk [vmem:[#allocation4 + $0x18] sm:$0xff] %vm836_vm1, %v1840_v12  ;;  %v1852_v20 = vmax.f32 %v1840_v12, 0.0 }
 0x379   :  { %1853 = vst.msk [vmem:[#allocation3] sm:$0xff] %vm836_vm1, %v1849_v25  ;;  %v1839_v10 = vmul.f32 %v3953_v2, %v3951_v33  ;;  %v1866_v33 = vld [vmem:[#allocation2 + $0xa8] sm:$0xff] }
 0x37a   :  { %1856 = vst.msk [vmem:[#allocation3 + $0x18] sm:$0xff] %vm836_vm1, %v1852_v20  ;;  %v1865_v20 = vld [vmem:[#allocation2 + $0xa0] sm:$0xff] }
 0x37b   :  { %1847 = vst.msk [vmem:[#allocation4 + $0x10] sm:$0xff] %vm836_vm1, %v1839_v10  ;;  %v1851_v37 = vmax.f32 %v1839_v10, 0.0 }
 0x37c   :  { %v1858_v44 = vld [vmem:[#allocation4 + $0x8] sm:$0xff] }
 0x37d   :  { %1855 = vst.msk [vmem:[#allocation3 + $0x10] sm:$0xff] %vm836_vm1, %v1851_v37 }
 0x37e   :  { %v1857_v45 = vld [vmem:[#allocation4] sm:$0xff]  ;;  %v2188_v52 = vld [vmem:[#allocation3 + $0x8] sm:$0xff] }
 0x37f   :  { %v3858_v57 = vpack.c.bf16 %v1858_v44, %v1857_v45  ;;  %v1860_v38 = vld [vmem:[#allocation4 + $0x18] sm:$0xff] }
 0x380   :  { %v2187_v0 = vld [vmem:[#allocation3] sm:$0xff] }
 0x381   :  { %3859 = vmatprep.subr.bf16.mxu1 %v3858_v57  ;;  %v3866_v17 = vpack.c.bf16 %v2188_v52, %v2187_v0  ;;  %v2190_v56 = vld [vmem:[#allocation3 + $0x18] sm:$0xff] }
 0x382   :  { %3861 = vmatpush3.bf16.msra.mxu1 %v3858_v57  ;;  %v1859_v46 = vld [vmem:[#allocation4 + $0x10] sm:$0xff] }
 0x383   :  { %3867 = vmatprep.subr.bf16.mxu0 %v3866_v17  ;;  %v3862_v13 = vpack.c.bf16 %v1860_v38, %v1859_v46 }
 0x384   :  { %3869 = vmatpush3.bf16.msra.mxu0 %v3866_v17  ;;  %v2189_v28 = vld [vmem:[#allocation3 + $0x10] sm:$0xff] }
 0x385   :  { %3863 = vmatprep.subr.bf16.mxu1 %v3862_v13  ;;  %v3870_v19 = vpack.c.bf16 %v2190_v56, %v2189_v28  ;;  %v1868_v56 = vld [vmem:[#allocation2 + $0xb8] sm:$0xff] }
 0x386   :  { %3865 = vmatpush3.bf16.msra.mxu1 %v3862_v13 }
 0x387   :  { %3871 = vmatprep.subr.bf16.mxu0 %v3870_v19 }
 0x388   :  { %3873 = vmatpush3.bf16.msra.mxu0 %v3870_v19 }
 0x389   :  { %3491 = vmatmul.mubr.msk.f32.vlgmr.msra.gmra.mrb[44].mxu1 %vm642_vm0, %v5383_v53  ;;  %v5580_v53 = vld [vmem:[%s5929_s5 + $0x20] sm:$0xff] }
 0x38a   :  { %3493 = vmatprep.mubr.msk.f32.mxu1 %vm642_vm0, %v5389_v54  ;;  %v5591_v54 = vld [vmem:[%s5929_s5 + $0x28] sm:$0xff] }
 0x38b   :  { %3523 = vmatmul.mubr.msk.f32.vlgmr.msra.gmra.mrb[68].mxu0 %vm642_vm0, %v5555_v42 }
 0x38c   :  { %3525 = vmatprep.mubr.msk.f32.mxu0 %vm642_vm0, %v5562_v22 }
 0x38d   :  { %3494 = vmatmul.mubr.msk.f32.gmra.mrb[46].mxu1 %vm642_vm0, %v5402_v61  ;;  %v5598_v61 = vld [vmem:[%s5929_s5 + $0x30] sm:$0xff] }
 0x38e   :  { %3496 = vmatprep.mubr.msk.f32.mxu1 %vm642_vm0, %v5407_v36  ;;  %v5609_v36 = vld [vmem:[%s5929_s5 + $0x38] sm:$0xff] }
 0x38f   :  { %3526 = vmatmul.mubr.msk.f32.gmra.mrb[70].mxu0 %vm642_vm0, %v5573_v31 }
 0x390   :  { %3528 = vmatprep.mubr.msk.f32.mxu0 %vm642_vm0, %v5580_v53 }
 0x391   :  { %3497 = vmatmul.mubr.msk.f32.gmra.mrb[48].mxu1 %vm642_vm0, %v5420_v5  ;;  %v5616_v5 = vld [vmem:[%s5929_s5 + $0x40] sm:$0xff] }
 0x392   :  { %3499 = vmatprep.mubr.msk.f32.mxu1 %vm642_vm0, %v5425_v8  ;;  %v5627_v8 = vld [vmem:[%s5929_s5 + $0x48] sm:$0xff] }
 0x393   :  { %3529 = vmatmul.mubr.msk.f32.gmra.mrb[72].mxu0 %vm642_vm0, %v5591_v54 }
 0x394   :  { %3531 = vmatprep.mubr.msk.f32.mxu0 %vm642_vm0, %v5598_v61 }
 0x395   :  { %3500 = vmatmul.mubr.msk.f32.gmra.mrb[50].mxu1 %vm642_vm0, %v5438_v9  ;;  %v5634_v9 = vld [vmem:[%s5929_s5 + $0x50] sm:$0xff] }
 0x396   :  { %3502 = vmatprep.mubr.msk.f32.mxu1 %vm642_vm0, %v5443_v14  ;;  %v5645_v14 = vld [vmem:[%s5929_s5 + $0x58] sm:$0xff] }
 0x397   :  { %3532 = vmatmul.mubr.msk.f32.gmra.mrb[74].mxu0 %vm642_vm0, %v5609_v36 }
 0x398   :  { %3534 = vmatprep.mubr.msk.f32.mxu0 %vm642_vm0, %v5616_v5 }
 0x399   :  { %3503 = vmatmul.mubr.msk.f32.gmra.mrb[52].mxu1 %vm642_vm0, %v5454_v15  ;;  %v5652_v15 = vld [vmem:[%s5929_s5 + $0x60] sm:$0xff] }
 0x39a   :  { %3505 = vmatprep.mubr.msk.f32.mxu1 %vm642_vm0, %v5460_v35  ;;  %v5663_v35 = vld [vmem:[%s5929_s5 + $0x68] sm:$0xff] }
 0x39b   :  { %3535 = vmatmul.mubr.msk.f32.gmra.mrb[76].mxu0 %vm642_vm0, %v5627_v8 }
 0x39c   :  { %3537 = vmatprep.mubr.msk.f32.mxu0 %vm642_vm0, %v5634_v9 }
 0x39d   :  { %3506 = vmatmul.mubr.msk.f32.gmra.mrb[54].mxu1 %vm642_vm0, %v5469_v23  ;;  %v5670_v23 = vld [vmem:[%s5929_s5 + $0x70] sm:$0xff] }
 0x39e   :  { %3508 = vmatprep.mubr.msk.f32.mxu1 %vm642_vm0, %v5474_v47  ;;  %v5681_v47 = vld [vmem:[%s5929_s5 + $0x78] sm:$0xff] }
 0x39f   :  { %3538 = vmatmul.mubr.msk.f32.gmra.mrb[78].mxu0 %vm642_vm0, %v5645_v14 }
 0x3a0   :  { %3540 = vmatprep.mubr.msk.f32.mxu0 %vm642_vm0, %v5652_v15 }
 0x3a1   :  { %3509 = vmatmul.mubr.msk.f32.gmra.mrb[56].mxu1 %vm642_vm0, %v5483_v51  ;;  %v5689_v51 = vpop.permute.xlu1 %2198 }
 0x3a2   :  { %3511 = vmatprep.mubr.msk.f32.mxu1 %vm642_vm0, %v5488_v59  ;;  %v5691_v59 = vpop.permute.xlu0 %2193 }
 0x3a3   :  { %3541 = vmatmul.mubr.msk.f32.gmra.mrb[80].mxu0 %vm642_vm0, %v5663_v35 }
 0x3a4   :  { %3543 = vmatprep.mubr.msk.f32.mxu0 %vm642_vm0, %v5670_v23 }
 0x3a5   :  { %3512 = vmatmul.mubr.msk.f32.gmra.mrb[58].mxu1 %vm642_vm0, %v5497_v63  ;;  %v5693_v21 = vpop.permute.xlu1 %2208 }
 0x3a6   :  { %3554 = vmatprep.mubr.msk.f32.mxu1 %vm642_vm0, %v5504_v27  ;;  %v5695_v3 = vpop.permute.xlu0 %2203 }
 0x3a7   :  { %3544 = vmatmul.mubr.msk.f32.gmra.mrb[82].mxu0 %vm642_vm0, %v5681_v47 }
 0x3a9   :  { %v5697_v62 = vpop.permute.xlu1 %2218 }
 0x3aa   :  { %v5699_v4 = vpop.permute.xlu0 %2213 }
 0x3ad   :  { %v5707_v41 = vpop.permute.xlu1 %2228 }
 0x3ae   :  { %v5713_v6 = vpop.permute.xlu0 %2223 }
 0x3b1   :  { %v5726_v0 = vpop.permute.xlu1 %2238 }
 0x3b2   :  { %v5729_v28 = vpop.permute.xlu0 %2233 }
 0x45c   :  { %v3492_v24 = vpop.f32.mrb[44].mxu1 }
 0x45d   :  { %v2023_v63 = vadd.f32 %v3492_v24, %v1862_v26  ;;  %v1943_v27 = vpop.f32.mrb[45].mxu1  ;;  %v1867_v26 = vld [vmem:[#allocation2 + $0xb0] sm:$0xff] }
 0x45e   :  { %v2022_v40 = vadd.f32 %v1943_v27, %v1861_v55  ;;  %v3524_v50 = vpop.f32.mrb[68].mxu0 }
 0x45f   :  { %v2855_v58 = vmul.f32 -1.442695, %v2023_v63  ;;  %v2391_v60 = vadd.f32 %v3524_v50, %v5689_v51  ;;  %v2385_v29 = vpop.f32.mrb[69].mxu0 }
 0x460   :  { %v2854_v34 = vmul.f32 -1.442695, %v2022_v40  ;;  %v2386_v48 = vadd.f32 %v2385_v29, %v5691_v59  ;;  %v3495_v11 = vpop.f32.mrb[46].mxu1 }
 0x461   :  { %3954 = vpow2.f32 %v2855_v58  ;;  %2465 = vst.msk [vmem:[%s5930_s7 + $0x8] sm:$0xff] %vm836_vm1, %v2391_v60  ;;  %v2025_v32 = vadd.f32 %v3495_v11, %v1864_v1  ;;  %v1953_v16 = vpop.f32.mrb[47].mxu1  ;;  %v1870_v1 = vld [vmem:[#allocation2 + $0xc8] sm:$0xff] }
 0x462   :  { %3956 = vpow2.f32 %v2854_v34  ;;  %2464 = vst.msk [vmem:[%s5930_s7] sm:$0xff] %vm836_vm1, %v2386_v48  ;;  %v3527_v43 = vpop.f32.mrb[70].mxu0  ;;  %v2024_v18 = vadd.f32 %v1953_v16, %v1863_v30  ;;  %v5745_v30 = vpop.permute.xlu1 %2248 }
 0x463   :  { %v2857_v7 = vmul.f32 -1.442695, %v2025_v32  ;;  %v2401_v49 = vadd.f32 %v3527_v43, %v5693_v21  ;;  %v2395_v39 = vpop.f32.mrb[71].mxu0  ;;  %v1869_v43 = vld [vmem:[#allocation2 + $0xc0] sm:$0xff] }
 0x464   :  { %v2396_v12 = vadd.f32 %v2395_v39, %v5695_v3  ;;  %v3498_v25 = vpop.f32.mrb[48].mxu1  ;;  %v2856_v38 = vmul.f32 -1.442695, %v2024_v18 }
 0x465   :  { %3958 = vpow2.f32 %v2857_v7  ;;  %2467 = vst.msk [vmem:[%s5930_s7 + $0x18] sm:$0xff] %vm836_vm1, %v2401_v49  ;;  %v2027_v2 = vadd.f32 %v3498_v25, %v1866_v33  ;;  %v1963_v10 = vpop.f32.mrb[49].mxu1 }
 0x466   :  { %2466 = vst.msk [vmem:[%s5930_s7 + $0x10] sm:$0xff] %vm836_vm1, %v2396_v12  ;;  %v2026_v37 = vadd.f32 %v1963_v10, %v1865_v20  ;;  %v3530_v44 = vpop.f32.mrb[72].mxu0  ;;  %v5751_v12 = vpop.permute.xlu0 %2243 }
 0x467   :  { %v2859_v45 = vmul.f32 -1.442695, %v2027_v2  ;;  %v2411_v52 = vadd.f32 %v3530_v44, %v5697_v62  ;;  %v2405_v57 = vpop.f32.mrb[73].mxu0  ;;  %v1872_v44 = vld [vmem:[#allocation2 + $0xd8] sm:$0xff] }
 0x468   :  { %v2858_v17 = vmul.f32 -1.442695, %v2026_v37  ;;  %v2406_v46 = vadd.f32 %v2405_v57, %v5699_v4  ;;  %v3501_v13 = vpop.f32.mrb[50].mxu1  ;;  %v1871_v57 = vld [vmem:[#allocation2 + $0xd0] sm:$0xff] }
 0x469   :  { %3960 = vpow2.f32 %v2859_v45  ;;  %2469 = vst.msk [vmem:[%s5930_s7 + $0x28] sm:$0xff] %vm836_vm1, %v2411_v52  ;;  %v2029_v19 = vadd.f32 %v3501_v13, %v1868_v56  ;;  %v1973_v24 = vpop.f32.mrb[51].mxu1 }
 0x46a   :  { %3962 = vpow2.f32 %v2858_v17  ;;  %2468 = vst.msk [vmem:[%s5930_s7 + $0x20] sm:$0xff] %vm836_vm1, %v2406_v46  ;;  %v2028_v63 = vadd.f32 %v1973_v24, %v1867_v26  ;;  %v3533_v55 = vpop.f32.mrb[74].mxu0 }
 0x46b   :  { %v3955_v27 = vpop.eup %3954  ;;  %v2861_v40 = vmul.f32 -1.442695, %v2029_v19  ;;  %v2421_v50 = vadd.f32 %v3533_v55, %v5707_v41  ;;  %v2415_v58 = vpop.f32.mrb[75].mxu0  ;;  %3964 = vpow2.f32 %v2856_v38 }
 0x46c   :  { %v3957_v60 = vpop.eup %3956  ;;  %v2075_v29 = vadd.f32 1.0, %v3955_v27  ;;  %v2860_v34 = vmul.f32 -1.442695, %v2028_v63  ;;  %v2416_v48 = vadd.f32 %v2415_v58, %v5713_v6  ;;  %v3504_v11 = vpop.f32.mrb[52].mxu1 }
 0x46d   :  { %v2074_v32 = vadd.f32 1.0, %v3957_v60  ;;  %3966 = vpow2.f32 %v2861_v40  ;;  %2471 = vst.msk [vmem:[%s5930_s7 + $0x38] sm:$0xff] %vm836_vm1, %v2421_v50  ;;  %v2031_v16 = vadd.f32 %v3504_v11, %v1870_v1  ;;  %v1983_v7 = vpop.f32.mrb[53].mxu1  ;;  %v5764_v63 = vpop.permute.xlu1 %2258  ;;  %v1874_v50 = vld [vmem:[#allocation2 + $0xe8] sm:$0xff]  ;;  %v1873_v11 = vld [vmem:[#allocation2 + $0xe0] sm:$0xff] }
 0x46e   :  { %2470 = vst.msk [vmem:[%s5930_s7 + $0x30] sm:$0xff] %vm836_vm1, %v2416_v48  ;;  %v2030_v49 = vadd.f32 %v1983_v7, %v1869_v43  ;;  %v3536_v39 = vpop.f32.mrb[76].mxu0  ;;  %3968 = vrcp.f32 %v2075_v29  ;;  %v5767_v60 = vpop.permute.xlu0 %2253 }
 0x46f   :  { %v3959_v18 = vpop.eup %3958  ;;  %v2863_v33 = vmul.f32 -1.442695, %v2031_v16  ;;  %v2431_v25 = vadd.f32 %v3536_v39, %v5726_v0  ;;  %v2425_v2 = vpop.f32.mrb[77].mxu0  ;;  %3970 = vpow2.f32 %v2860_v34 }
 0x470   :  { %v2077_v20 = vadd.f32 1.0, %v3959_v18  ;;  %v2862_v10 = vmul.f32 -1.442695, %v2030_v49  ;;  %v2426_v37 = vadd.f32 %v2425_v2, %v5729_v28  ;;  %v3507_v45 = vpop.f32.mrb[54].mxu1  ;;  %3972 = vrcp.f32 %v2074_v32 }
 0x471   :  { %2473 = vst.msk [vmem:[%s5930_s7 + $0x48] sm:$0xff] %vm836_vm1, %v2431_v25  ;;  %v2033_v52 = vadd.f32 %v3507_v45, %v1872_v44  ;;  %v1993_v38 = vpop.f32.mrb[55].mxu1  ;;  %3974 = vpow2.f32 %v2863_v33  ;;  %v1876_v33 = vld [vmem:[#allocation2 + $0xf8] sm:$0xff]  ;;  %v5783_v44 = vpop.permute.xlu1 %2268 }
 0x472   :  { %2472 = vst.msk [vmem:[%s5930_s7 + $0x40] sm:$0xff] %vm836_vm1, %v2426_v37  ;;  %v2032_v17 = vadd.f32 %v1993_v38, %v1871_v57  ;;  %v3539_v46 = vpop.f32.mrb[78].mxu0  ;;  %3976 = vrcp.f32 %v2077_v20 }
 0x473   :  { %v3961_v56 = vpop.eup %3960  ;;  %v2865_v13 = vmul.f32 -1.442695, %v2033_v52  ;;  %v2441_v19 = vadd.f32 %v3539_v46, %v5745_v30  ;;  %v2435_v26 = vpop.f32.mrb[79].mxu0  ;;  %3978 = vpow2.f32 %v2862_v10  ;;  %v1875_v52 = vld [vmem:[#allocation2 + $0xf0] sm:$0xff] }
 0x474   :  { %v3963_v24 = vpop.eup %3962  ;;  %v2079_v55 = vadd.f32 1.0, %v3961_v56  ;;  %v2864_v27 = vmul.f32 -1.442695, %v2032_v17  ;;  %v2436_v40 = vadd.f32 %v2435_v26, %v5751_v12  ;;  %v3510_v58 = vpop.f32.mrb[56].mxu1 }
 0x475   :  { %v2078_v29 = vadd.f32 1.0, %v3963_v24  ;;  %3980 = vpow2.f32 %v2865_v13  ;;  %2475 = vst.msk [vmem:[%s5930_s7 + $0x58] sm:$0xff] %vm836_vm1, %v2441_v19  ;;  %v2035_v34 = vadd.f32 %v3510_v58, %v1874_v50  ;;  %v2003_v48 = vpop.f32.mrb[57].mxu1  ;;  %v3965_v1 = vpop.eup %3964 }
 0x476   :  { %3982 = vrcp.f32 %v2079_v55  ;;  %2474 = vst.msk [vmem:[%s5930_s7 + $0x50] sm:$0xff] %vm836_vm1, %v2436_v40  ;;  %v3542_v32 = vpop.f32.mrb[80].mxu0  ;;  %v2034_v43 = vadd.f32 %v2003_v48, %v1873_v11  ;;  %v2076_v45 = vadd.f32 1.0, %v3965_v1  ;;  %v5789_v17 = vpop.permute.xlu0 %2263 }
 0x477   :  { %v3967_v16 = vpop.eup %3966  ;;  %3984 = vrcp.f32 %v2078_v29  ;;  %v2451_v7 = vadd.f32 %v3542_v32, %v5764_v63  ;;  %v2445_v49 = vpop.f32.mrb[81].mxu0  ;;  %v2115_v29 = vld [vmem:[#allocation5 + $0x8] sm:$0xff]  ;;  %v2114_v32 = vld [vmem:[#allocation5] sm:$0xff] }
 0x478   :  { %v2081_v39 = vadd.f32 1.0, %v3967_v16  ;;  %3986 = vpow2.f32 %v2864_v27  ;;  %v2446_v18 = vadd.f32 %v2445_v49, %v5767_v60  ;;  %v3513_v25 = vpop.f32.mrb[58].mxu1  ;;  %v3969_v2 = vpop.eup %3968  ;;  %v2117_v49 = vld [vmem:[#allocation5 + $0x18] sm:$0xff] }
 0x479   :  { %3988 = vtanh.f32 %v2035_v34  ;;  %2477 = vst.msk [vmem:[%s5930_s7 + $0x68] sm:$0xff] %vm836_vm1, %v2451_v7  ;;  %v2037_v20 = vadd.f32 %v3513_v25, %v1876_v33  ;;  %v2013_v10 = vpop.f32.mrb[59].mxu1  ;;  %v3971_v37 = vpop.eup %3970 }
 0x47a   :  { %3990 = vrcp.f32 %v2081_v39  ;;  %2476 = vst.msk [vmem:[%s5930_s7 + $0x60] sm:$0xff] %vm836_vm1, %v2446_v18  ;;  %v3545_v57 = vpop.f32.mrb[82].mxu0  ;;  %v3973_v38 = vpop.eup %3972  ;;  %v2080_v46 = vadd.f32 1.0, %v3971_v37  ;;  %v2036_v56 = vadd.f32 %v2013_v10, %v1875_v52  ;;  %v2116_v52 = vld [vmem:[#allocation5 + $0x10] sm:$0xff] }
 0x47b   :  { %3992 = vtanh.f32 %v2034_v43  ;;  %v2461_v13 = vadd.f32 %v3545_v57, %v5783_v44  ;;  %v2455_v19 = vpop.f32.mrb[83].mxu0  ;;  %v3975_v26 = vpop.eup %3974 }
 0x47c   :  { %3994 = vtanh.f32 %v2037_v20  ;;  %v2456_v24 = vadd.f32 %v2455_v19, %v5789_v17  ;;  %v3977_v55 = vpop.eup %3976  ;;  %v2083_v1 = vadd.f32 1.0, %v3975_v26 }
 0x47d   :  { %3996 = vrcp.f32 %v2080_v46  ;;  %2479 = vst.msk [vmem:[%s5930_s7 + $0x78] sm:$0xff] %vm836_vm1, %v2461_v13  ;;  %v3979_v27 = vpop.eup %3978 }
 0x47e   :  { %3998 = vrcp.f32 %v2076_v45  ;;  %2478 = vst.msk [vmem:[%s5930_s7 + $0x70] sm:$0xff] %vm836_vm1, %v2456_v24  ;;  %v2082_v16 = vadd.f32 1.0, %v3979_v27 }
 0x47f   :  { %v3981_v40 = vpop.eup %3980  ;;  %4000 = vtanh.f32 %v2036_v56 }
 0x480   :  { %v3983_v50 = vpop.eup %3982  ;;  %v2085_v25 = vadd.f32 1.0, %v3981_v40  ;;  %4002 = vrcp.f32 %v2083_v1 }
 0x481   :  { %v3985_v58 = vpop.eup %3984  ;;  %v2119_v48 = vmul.f32 %v3983_v50, %v2115_v29  ;;  %4004 = vrcp.f32 %v2082_v16 }
 0x482   :  { %v3987_v34 = vpop.eup %3986  ;;  %v2118_v7 = vmul.f32 %v3985_v58, %v2114_v32 }
 0x483   :  { %v3989_v11 = vpop.eup %3988 }
 0x484   :  { %v3991_v43 = vpop.eup %3990  ;;  %v2123_v39 = vmul.f32 %v3989_v11, %v3969_v2  ;;  %v2084_v2 = vadd.f32 1.0, %v3987_v34 }
 0x485   :  { %v3993_v18 = vpop.eup %3992  ;;  %v2121_v33 = vmul.f32 %v3991_v43, %v2117_v49 }
 0x486   :  { %v3995_v20 = vpop.eup %3994  ;;  %v2127_v10 = vadd.f32 %v2123_v39, %v2119_v48  ;;  %v2122_v37 = vmul.f32 %v3993_v18, %v3973_v38 }
 0x487   :  { %v3997_v45 = vpop.eup %3996  ;;  %v2125_v57 = vmul.f32 %v3995_v20, %v3977_v55 }
 0x488   :  { %v3999_v46 = vpop.eup %3998  ;;  %v2120_v56 = vmul.f32 %v3997_v45, %v2116_v52  ;;  %4006 = vtanh.f32 %v2127_v10  ;;  %2139 = vst.msk [vmem:[#allocation5 + $0x8] sm:$0xff] %vm836_vm1, %v2127_v10  ;;  %v2126_v13 = vadd.f32 %v2122_v37, %v2118_v7 }
 0x489   :  { %v4001_v19 = vpop.eup %4000  ;;  %4008 = vrcp.f32 %v2085_v25  ;;  %v2129_v26 = vadd.f32 %v2125_v57, %v2121_v33 }
 0x48a   :  { %4010 = vtanh.f32 %v2126_v13  ;;  %2138 = vst.msk [vmem:[#allocation5] sm:$0xff] %vm836_vm1, %v2126_v13  ;;  %v2124_v24 = vmul.f32 %v4001_v19, %v3999_v46  ;;  %v4003_v55 = vpop.eup %4002 }
 0x48b   :  { %4012 = vtanh.f32 %v2129_v26  ;;  %2141 = vst.msk [vmem:[#allocation5 + $0x18] sm:$0xff] %vm836_vm1, %v2129_v26  ;;  %v4005_v27 = vpop.eup %4004 }
 0x48c   :  { %v2128_v38 = vadd.f32 %v2124_v24, %v2120_v56  ;;  %4014 = vrcp.f32 %v2084_v2 }
 0x48e   :  { %4016 = vtanh.f32 %v2128_v38  ;;  %2140 = vst.msk [vmem:[#allocation5 + $0x10] sm:$0xff] %vm836_vm1, %v2128_v38 }
 0x492   :  { %v4007_v40 = vpop.eup %4006 }
 0x493   :  { %v4009_v50 = vpop.eup %4008  ;;  %v2135_v58 = vmul.f32 %v4007_v40, %v4003_v55 }
 0x494   :  { %v4011_v29 = vpop.eup %4010 }
 0x495   :  { %v4013_v34 = vpop.eup %4012  ;;  %2143 = vst.msk [vmem:[#allocation4 + $0x8] sm:$0xff] %vm836_vm1, %v2135_v58  ;;  %v2147_v48 = vmax.f32 %v2135_v58, 0.0  ;;  %v2134_v1 = vmul.f32 %v4011_v29, %v4005_v27 }
 0x496   :  { %v2137_v11 = vmul.f32 %v4013_v34, %v4009_v50  ;;  %v4015_v32 = vpop.eup %4014 }
 0x497   :  { %2152 = vst.msk [vmem:[#allocation3 + $0x28] sm:$0xff] %vm836_vm1, %v2147_v48  ;;  %2142 = vst.msk [vmem:[#allocation4] sm:$0xff] %vm836_vm1, %v2134_v1  ;;  %v2146_v16 = vmax.f32 %v2134_v1, 0.0 }
 0x498   :  { %v4017_v43 = vpop.eup %4016  ;;  %2145 = vst.msk [vmem:[#allocation4 + $0x18] sm:$0xff] %vm836_vm1, %v2137_v11  ;;  %v2149_v7 = vmax.f32 %v2137_v11, 0.0 }
 0x499   :  { %2151 = vst.msk [vmem:[#allocation3 + $0x20] sm:$0xff] %vm836_vm1, %v2146_v16  ;;  %v2136_v49 = vmul.f32 %v4017_v43, %v4015_v32 }
 0x49a   :  { %2154 = vst.msk [vmem:[#allocation3 + $0x38] sm:$0xff] %vm836_vm1, %v2149_v7 }
 0x49b   :  { %2144 = vst.msk [vmem:[#allocation4 + $0x10] sm:$0xff] %vm836_vm1, %v2136_v49  ;;  %v2148_v39 = vmax.f32 %v2136_v49, 0.0 }
 0x49d   :  { %2153 = vst.msk [vmem:[#allocation3 + $0x30] sm:$0xff] %vm836_vm1, %v2148_v39 }
 0x49e   :  { %v2481_v18 = vld [vmem:[#allocation3 + $0x28] sm:$0xff] }
 0x4a0   :  { %v2480_v33 = vld [vmem:[#allocation3 + $0x20] sm:$0xff] }
 0x4a1   :  { %v3874_v25 = vpack.c.bf16 %v2481_v18, %v2480_v33  ;;  %v2483_v20 = vld [vmem:[#allocation3 + $0x38] sm:$0xff] }
 0x4a3   :  { %3875 = vmatprep.subr.bf16.mxu1 %v3874_v25 }
 0x4a4   :  { %3877 = vmatpush3.bf16.msra.mxu1 %v3874_v25  ;;  %v2482_v10 = vld [vmem:[#allocation3 + $0x30] sm:$0xff] }
 0x4a5   :  { %v3878_v37 = vpack.c.bf16 %v2483_v20, %v2482_v10 }
 0x4a7   :  { %3879 = vmatprep.subr.bf16.mxu1 %v3878_v37 }
 0x4a8   :  { %3881 = vmatpush3.bf16.msra.mxu1 %v3878_v37 }
 0x4ab   :  { %3555 = vmatmul.mubr.msk.f32.vlgmr.msra.gmra.mrb[60].mxu1 %vm642_vm0, %v5555_v42 }
 0x4ac   :  { %3557 = vmatprep.mubr.msk.f32.mxu1 %vm642_vm0, %v5562_v22 }
 0x4af   :  { %3558 = vmatmul.mubr.msk.f32.gmra.mrb[62].mxu1 %vm642_vm0, %v5573_v31 }
 0x4b0   :  { %3560 = vmatprep.mubr.msk.f32.mxu1 %vm642_vm0, %v5580_v53 }
 0x4b3   :  { %3561 = vmatmul.mubr.msk.f32.gmra.mrb[64].mxu1 %vm642_vm0, %v5591_v54 }
 0x4b4   :  { %3563 = vmatprep.mubr.msk.f32.mxu1 %vm642_vm0, %v5598_v61 }
 0x4b7   :  { %3564 = vmatmul.mubr.msk.f32.gmra.mrb[66].mxu1 %vm642_vm0, %v5609_v36 }
 0x4b8   :  { %3566 = vmatprep.mubr.msk.f32.mxu1 %vm642_vm0, %v5616_v5 }
 0x4bb   :  { %3567 = vmatmul.mubr.msk.f32.gmra.mrb[68].mxu1 %vm642_vm0, %v5627_v8 }
 0x4bc   :  { %3569 = vmatprep.mubr.msk.f32.mxu1 %vm642_vm0, %v5634_v9 }
 0x4bf   :  { %3570 = vmatmul.mubr.msk.f32.gmra.mrb[70].mxu1 %vm642_vm0, %v5645_v14 }
 0x4c0   :  { %3572 = vmatprep.mubr.msk.f32.mxu1 %vm642_vm0, %v5652_v15 }
 0x4c3   :  { %3573 = vmatmul.mubr.msk.f32.gmra.mrb[72].mxu1 %vm642_vm0, %v5663_v35 }
 0x4c4   :  { %3575 = vmatprep.mubr.msk.f32.mxu1 %vm642_vm0, %v5670_v23 }
 0x4c7   :  { %3576 = vmatmul.mubr.msk.f32.gmra.mrb[74].mxu1 %vm642_vm0, %v5681_v47 }
 0x57e   :  { %v3556_v42 = vpop.f32.mrb[60].mxu1 }
 0x57f   :  { %v2556_v22 = vadd.f32 %v3556_v42, %v5689_v51  ;;  %v2550_v31 = vpop.f32.mrb[61].mxu1 }
 0x580   :  { %v2551_v53 = vadd.f32 %v2550_v31, %v5691_v59 }
 0x581   :  { %2899 = vst.msk [vmem:[%s5930_s7 + $0x88] sm:$0xff] %vm836_vm1, %v2556_v22 }
 0x582   :  { %2898 = vst.msk [vmem:[%s5930_s7 + $0x80] sm:$0xff] %vm836_vm1, %v2551_v53  ;;  %v3559_v54 = vpop.f32.mrb[62].mxu1 }
 0x583   :  { %v2566_v61 = vadd.f32 %v3559_v54, %v5693_v21  ;;  %v2560_v36 = vpop.f32.mrb[63].mxu1 }
 0x584   :  { %v2561_v5 = vadd.f32 %v2560_v36, %v5695_v3 }
 0x585   :  { %2901 = vst.msk [vmem:[%s5930_s7 + $0x98] sm:$0xff] %vm836_vm1, %v2566_v61 }
 0x586   :  { %2900 = vst.msk [vmem:[%s5930_s7 + $0x90] sm:$0xff] %vm836_vm1, %v2561_v5  ;;  %v3562_v8 = vpop.f32.mrb[64].mxu1 }
 0x587   :  { %v2576_v9 = vadd.f32 %v3562_v8, %v5697_v62  ;;  %v2570_v14 = vpop.f32.mrb[65].mxu1 }
 0x588   :  { %v2571_v15 = vadd.f32 %v2570_v14, %v5699_v4 }
 0x589   :  { %2903 = vst.msk [vmem:[%s5930_s7 + $0xa8] sm:$0xff] %vm836_vm1, %v2576_v9 }
 0x58a   :  { %2902 = vst.msk [vmem:[%s5930_s7 + $0xa0] sm:$0xff] %vm836_vm1, %v2571_v15  ;;  %v3565_v35 = vpop.f32.mrb[66].mxu1 }
 0x58b   :  { %v2586_v23 = vadd.f32 %v3565_v35, %v5707_v41  ;;  %v2580_v47 = vpop.f32.mrb[67].mxu1 }
 0x58c   :  { %v2581_v51 = vadd.f32 %v2580_v47, %v5713_v6 }
 0x58d   :  { %2905 = vst.msk [vmem:[%s5930_s7 + $0xb8] sm:$0xff] %vm836_vm1, %v2586_v23 }
 0x58e   :  { %2904 = vst.msk [vmem:[%s5930_s7 + $0xb0] sm:$0xff] %vm836_vm1, %v2581_v51  ;;  %v3568_v59 = vpop.f32.mrb[68].mxu1 }
 0x58f   :  { %v2596_v21 = vadd.f32 %v3568_v59, %v5726_v0  ;;  %v2590_v3 = vpop.f32.mrb[69].mxu1 }
 0x590   :  { %v2591_v62 = vadd.f32 %v2590_v3, %v5729_v28 }
 0x591   :  { %2907 = vst.msk [vmem:[%s5930_s7 + $0xc8] sm:$0xff] %vm836_vm1, %v2596_v21 }
 0x592   :  { %2906 = vst.msk [vmem:[%s5930_s7 + $0xc0] sm:$0xff] %vm836_vm1, %v2591_v62  ;;  %v3571_v4 = vpop.f32.mrb[70].mxu1 }
 0x593   :  { %v2606_v41 = vadd.f32 %v3571_v4, %v5745_v30  ;;  %v2600_v6 = vpop.f32.mrb[71].mxu1 }
 0x594   :  { %v2601_v45 = vadd.f32 %v2600_v6, %v5751_v12 }
 0x595   :  { %2909 = vst.msk [vmem:[%s5930_s7 + $0xd8] sm:$0xff] %vm836_vm1, %v2606_v41 }
 0x596   :  { %2908 = vst.msk [vmem:[%s5930_s7 + $0xd0] sm:$0xff] %vm836_vm1, %v2601_v45  ;;  %v3574_v0 = vpop.f32.mrb[72].mxu1 }
 0x597   :  { %v2616_v28 = vadd.f32 %v3574_v0, %v5764_v63  ;;  %v2610_v52 = vpop.f32.mrb[73].mxu1 }
 0x598   :  { %v2611_v57 = vadd.f32 %v2610_v52, %v5767_v60 }
 0x599   :  { %2911 = vst.msk [vmem:[%s5930_s7 + $0xe8] sm:$0xff] %vm836_vm1, %v2616_v28 }
 0x59a   :  { %2910 = vst.msk [vmem:[%s5930_s7 + $0xe0] sm:$0xff] %vm836_vm1, %v2611_v57  ;;  %v3577_v30 = vpop.f32.mrb[74].mxu1 }
 0x59b   :  { %v2626_v12 = vadd.f32 %v3577_v30, %v5783_v44  ;;  %v2620_v46 = vpop.f32.mrb[75].mxu1 }
 0x59c   :  { %v2621_v56 = vadd.f32 %v2620_v46, %v5789_v17 }
 0x59d   :  { %2913 = vst.msk [vmem:[%s5930_s7 + $0xf8] sm:$0xff] %vm836_vm1, %v2626_v12 }
 0x59e   :  { %2912 = vst.msk [vmem:[%s5930_s7 + $0xf0] sm:$0xff] %vm836_vm1, %v2621_v56 }

</bundles_post_ra>
